<compile_context>
chip_gen: v7x
topology: tpu7x:2x2x1
jax: 0.10.0
libtpu: 0.0.40
codegen_flags: <defaults>
</compile_context>

<pallas_src>
import functools

import jax
import jax.numpy as jnp
from jax.experimental import pallas as pl
from jax.experimental.pallas import tpu as pltpu

HIDDEN = 50          # SGRU hidden size
OUT = 3              # fc1 / Leaky output size
NUM_GATES = 3        # GRU gates: r, z, n
GATE_PAD = 128       # lane-aligned slot per gate
OUT_PAD = 128        # lane-aligned fc / LIF width
LANE = 128
SUBLANE = 8

# Deterministic initial values of the learnable scalar parameters.
SGRU_THRESHOLD = 1.0   # SGRU(learn_threshold=True) -> init 1.0
LIF_BETA = 0.95        # snn.Leaky(beta=0.95, learn_beta=True)
LIF_THRESHOLD = 1.0    # snn.Leaky(threshold=1.0, learn_threshold=True)


def sgru_net_kernel(T, BP, x_ref, wih_ref, bih_ref, whh_ref, bhh_ref,
                    wfc_ref, bfc_ref, spk_out_ref, mem_out_ref, h_out_ref,
                    xproj_ref):
    """Single invocation: input projection + full T-step SGRU + fc1 + Leaky."""
    G = GATE_PAD

    # ---- Fused non-recurrent input projection: ONE (T*BP, Kp)@(Kp, 3G) matmul
    # into VMEM scratch (review item 1).
    xproj_ref[...] = (jnp.dot(x_ref[...], wih_ref[...],
                              preferred_element_type=jnp.float32)
                      + bih_ref[...])

    # Hoist loop-invariant recurrent weights (JAX does not CSE re-loads).
    whh = whh_ref[...]           # (G, 3G): gate g at cols [g*G, g*G+HIDDEN)
    bhh = bhh_ref[...]           # (1, 3G)

    # ---- Serial SGRU recurrence over time.  T is small -> static unroll.
    # TODO(synk): for T >> 32 switch to lax.fori_loop with partial unroll
    # (and pl.ds slicing) to bound code size / vreg live ranges.
    h = jnp.zeros((BP, G), jnp.float32)     # sgru1.reset_mem(): zeros (padded)
    for t in range(T):
        xg = xproj_ref[t * BP:(t + 1) * BP, :]      # aligned (BP, 3G) tile read
        hg = jnp.dot(h, whh, preferred_element_type=jnp.float32) + bhh
        # 128-lane-aligned gate slices (nn.GRUCell gate order: r, z, n).
        r = jax.nn.sigmoid(xg[:, 0 * G:1 * G] + hg[:, 0 * G:1 * G])
        z = jax.nn.sigmoid(xg[:, 1 * G:2 * G] + hg[:, 1 * G:2 * G])
        n = jnp.tanh(xg[:, 2 * G:3 * G] + r * hg[:, 2 * G:3 * G])
        h = (1.0 - z) * n + z * h
        # reset_mechanism='none': hidden state is not reset after firing.
        h_out_ref[t * BP:(t + 1) * BP, :] = h       # aligned unmasked store

    # ---- Batched fc1 pulled out of the serial loop (review item 3):
    # ONE (T*BP, G) @ (G, OUT_PAD) matmul over every timestep's spikes.
    spk2_all = (h_out_ref[...] - SGRU_THRESHOLD > 0).astype(jnp.float32)
    fc_all = (jnp.dot(spk2_all, wfc_ref[...],
                      preferred_element_type=jnp.float32) + bfc_ref[...])

    # ---- Leaky LIF: tiny elementwise scan, reset from the *previous* membrane
    # (subtract reset).  Padded lanes/rows stay inert or are sliced away.
    mem = jnp.zeros((BP, OUT_PAD), jnp.float32)     # lif1.init_leaky(): zeros
    for t in range(T):
        fc = fc_all[t * BP:(t + 1) * BP, :]
        reset = (mem - LIF_THRESHOLD > 0).astype(jnp.float32)
        mem = LIF_BETA * mem + fc - reset * LIF_THRESHOLD
        spk = (mem - LIF_THRESHOLD > 0).astype(jnp.float32)
        spk_out_ref[t * BP:(t + 1) * BP, :] = spk   # lane-dense aligned store
        mem_out_ref[t * BP:(t + 1) * BP, :] = mem


def _pad_gate_cols(w):
    """(rows, 3*HIDDEN) -> (rows, 3*GATE_PAD); gate g lives at [g*G, g*G+HIDDEN)."""
    rows = w.shape[0]
    out = jnp.zeros((rows, NUM_GATES * GATE_PAD), jnp.float32)
    for g in range(NUM_GATES):
        out = out.at[:, g * GATE_PAD:g * GATE_PAD + HIDDEN].set(
            w[:, g * HIDDEN:(g + 1) * HIDDEN].astype(jnp.float32))
    return out


def prepare_params(w_ih, w_hh, b_ih, b_hh, w_fc, b_fc):
    """Pad the learnable parameters to lane-aligned slots ONCE (review item 2).

    Padded columns/rows are exactly zero so the padded hidden/fc lanes stay
    exactly 0 through the recurrence.
    """
    D = w_ih.shape[1]
    Kp = ((D + LANE - 1) // LANE) * LANE
    G = GATE_PAD
    wih_p = jnp.zeros((Kp, NUM_GATES * G), jnp.float32)
    wih_p = wih_p.at[:D, :].set(_pad_gate_cols(w_ih.T))                 # (Kp, 3G)
    bih_p = _pad_gate_cols(b_ih.reshape(1, NUM_GATES * HIDDEN))         # (1, 3G)
    whh_p = jnp.zeros((G, NUM_GATES * G), jnp.float32)
    whh_p = whh_p.at[:HIDDEN, :].set(_pad_gate_cols(w_hh.T))            # (G, 3G)
    bhh_p = _pad_gate_cols(b_hh.reshape(1, NUM_GATES * HIDDEN))         # (1, 3G)
    wfc_p = jnp.zeros((G, OUT_PAD), jnp.float32)
    wfc_p = wfc_p.at[:HIDDEN, :OUT].set(w_fc.T.astype(jnp.float32))     # (G, OUT_PAD)
    bfc_p = jnp.zeros((1, OUT_PAD), jnp.float32)
    bfc_p = bfc_p.at[:, :OUT].set(b_fc.astype(jnp.float32))             # (1, OUT_PAD)
    return (wih_p, bih_p, whh_p, bhh_p, wfc_p, bfc_p)


@jax.jit
def _sgru_net_apply(x, padded_params):
    """x: (B, Hs, Ws, T).  Returns (spk_rec, mem_rec, h_rec).

    spk_rec/mem_rec are the module outputs, each (T, B, 3); h_rec (T, B, 50)
    is a diagnostic copy of the SGRU hidden state used only for validation.
    """
    wih_p, bih_p, whh_p, bhh_p, wfc_p, bfc_p = padded_params
    B, Hs, Ws, T = x.shape
    D = Hs * Ws
    Kp = wih_p.shape[0]
    BP = ((B + SUBLANE - 1) // SUBLANE) * SUBLANE    # sublane-padded batch

    # Layout glue (fuses into one small XLA op): (B,Hs,Ws,T) -> (T*BP, Kp),
    # zero-padded on batch rows and input lanes.
    xt = jnp.transpose(x.reshape(B, D, T), (2, 0, 1)).astype(jnp.float32)  # (T,B,D)
    xpad = jnp.zeros((T, BP, Kp), jnp.float32).at[:, :B, :D].set(xt)
    xflat = xpad.reshape(T * BP, Kp)

    kernel = functools.partial(sgru_net_kernel, T, BP)
    spk_f, mem_f, h_f = pl.pallas_call(
        kernel,
        out_shape=(jax.ShapeDtypeStruct((T * BP, OUT_PAD), jnp.float32),
                   jax.ShapeDtypeStruct((T * BP, OUT_PAD), jnp.float32),
                   jax.ShapeDtypeStruct((T * BP, GATE_PAD), jnp.float32)),
        scratch_shapes=[pltpu.VMEM((T * BP, NUM_GATES * GATE_PAD), jnp.float32)],
        # Gridless call: every operand/output is a whole-array VMEM block
        # (< 1 MiB total) — no tiling / vmem_limit override needed on any
        # generation (v5e/v6e/v7x).
        # TODO(synk): if batch grows, add a ("parallel",) grid axis over batch
        # so v7x's second TensorCore is used.
    )(xflat, wih_p, bih_p, whh_p, bhh_p, wfc_p, bfc_p)

    spk_rec = spk_f.reshape(T, BP, OUT_PAD)[:, :B, :OUT]
    mem_rec = mem_f.reshape(T, BP, OUT_PAD)[:, :B, :OUT]
    h_rec = h_f.reshape(T, BP, GATE_PAD)[:, :B, :HIDDEN]
    return spk_rec, mem_rec, h_rec


def sgru_net_forward(x, padded_params):
    """Module-equivalent forward: returns (spk_rec, mem_rec), each (T, B, 3)."""
    spk_rec, mem_rec, _ = _sgru_net_apply(x, padded_params)
    return spk_rec, mem_rec


def reference_forward(x, w_ih, w_hh, b_ih, b_hh, w_fc, b_fc):
    """Pure-JAX mirror of the PyTorch forward ('3D' mode) for validation."""
    B, Hs, Ws, T = x.shape
    D = Hs * Ws
    hp = jax.lax.Precision.HIGHEST
    xt = jnp.transpose(x.reshape(B, D, T), (2, 0, 1)).astype(jnp.float32)
    h = jnp.zeros((B, HIDDEN), jnp.float32)
    mem = jnp.zeros((B, OUT), jnp.float32)
    spks, mems, hs = [], [], []
    for t in range(T):
        gi = jnp.dot(xt[t], w_ih.T, precision=hp) + b_ih
        gh = jnp.dot(h, w_hh.T, precision=hp) + b_hh
        r = jax.nn.sigmoid(gi[:, :HIDDEN] + gh[:, :HIDDEN])
        z = jax.nn.sigmoid(gi[:, HIDDEN:2 * HIDDEN] + gh[:, HIDDEN:2 * HIDDEN])
        n = jnp.tanh(gi[:, 2 * HIDDEN:] + r * gh[:, 2 * HIDDEN:])
        h = (1.0 - z) * n + z * h
        spk2 = (h - SGRU_THRESHOLD > 0).astype(jnp.float32)
        fc = jnp.dot(spk2, w_fc.T, precision=hp) + b_fc
        reset = (mem - LIF_THRESHOLD > 0).astype(jnp.float32)
        mem = LIF_BETA * mem + fc - reset * LIF_THRESHOLD
        spks.append((mem - LIF_THRESHOLD > 0).astype(jnp.float32))
        mems.append(mem)
        hs.append(h)
    return jnp.stack(spks), jnp.stack(mems), jnp.stack(hs)


if __name__ == "__main__":
    # Small shapes consistent with the '3D' mode: spatial 10x10 -> D = 100
    # input features, hidden = 50, 3 output classes, batch = 2, 8 timesteps.
    B, Hs, Ws, T = 2, 10, 10, 8
    D = Hs * Ws

    key = jax.random.PRNGKey(0)
    k_x, k_wih, k_whh, k_bih, k_bhh, k_wfc, k_bfc = jax.random.split(key, 7)

    # Event-frame-like input values in [0, 1].
    x = jax.random.uniform(k_x, (B, Hs, Ws, T), dtype=jnp.float32)

    # nn.GRUCell(D, 50) params, uniform(-1/sqrt(H), 1/sqrt(H)) init,
    # gate order [r, z, n].
    kbnd = 1.0 / jnp.sqrt(jnp.float32(HIDDEN))
    w_ih = jax.random.uniform(k_wih, (NUM_GATES * HIDDEN, D), jnp.float32, -kbnd, kbnd)
    w_hh = jax.random.uniform(k_whh, (NUM_GATES * HIDDEN, HIDDEN), jnp.float32, -kbnd, kbnd)
    b_ih = jax.random.uniform(k_bih, (NUM_GATES * HIDDEN,), jnp.float32, -kbnd, kbnd)
    b_hh = jax.random.uniform(k_bhh, (NUM_GATES * HIDDEN,), jnp.float32, -kbnd, kbnd)

    # nn.Linear(50, 3) params.
    w_fc = jax.random.uniform(k_wfc, (OUT, HIDDEN), jnp.float32, -kbnd, kbnd)
    b_fc = jax.random.uniform(k_bfc, (OUT,), jnp.float32, -kbnd, kbnd)

    # Pad the learnable parameters once, outside the per-call path.
    params = prepare_params(w_ih, w_hh, b_ih, b_hh, w_fc, b_fc)
    jax.block_until_ready(params)

    # TODO(synk): the 'ROWS_COLUMNS' / 'INTEGRATE_*' modes use snntorch's
    # stochastic spikegen.rate Bernoulli encoding; only the deterministic '3D'
    # path is kernelized here.
    spk_rec, mem_rec, h_rec = _sgru_net_apply(x, params)
    jax.block_until_ready((spk_rec, mem_rec, h_rec))

    assert spk_rec.shape == (T, B, OUT) and mem_rec.shape == (T, B, OUT)

    # Validate against a pure-JAX mirror of the PyTorch forward.
    spk_ref, mem_ref, h_ref = reference_forward(x, w_ih, w_hh, b_ih, b_hh, w_fc, b_fc)
    assert bool(jnp.allclose(h_rec, h_ref, atol=1e-4, rtol=1e-4)), "hidden mismatch"
    assert bool(jnp.allclose(mem_rec, mem_ref, atol=1e-4, rtol=1e-4)), "mem mismatch"
    assert bool(jnp.array_equal(spk_rec, spk_ref)), "spk mismatch"

    print("KERNEL_OK")
</pallas_src>

<mosaic_0001>
module attributes {stable_mosaic.version = 11 : i64} {
  func.func @sgru_net_kernel(%arg0: memref<64x128xf32, #tpu.memory_space<vmem>>, %arg1: memref<128x384xf32, #tpu.memory_space<vmem>>, %arg2: memref<1x384xf32, #tpu.memory_space<vmem>>, %arg3: memref<128x384xf32, #tpu.memory_space<vmem>>, %arg4: memref<1x384xf32, #tpu.memory_space<vmem>>, %arg5: memref<128x128xf32, #tpu.memory_space<vmem>>, %arg6: memref<1x128xf32, #tpu.memory_space<vmem>>, %arg7: memref<64x128xf32, #tpu.memory_space<vmem>>, %arg8: memref<64x128xf32, #tpu.memory_space<vmem>>, %arg9: memref<64x128xf32, #tpu.memory_space<vmem>>, %arg10: memref<64x384xf32, #tpu.memory_space<vmem>>) attributes {dimension_semantics = [], scalar_prefetch = 0 : i64, scratch_operands = 1 : i64, tpu.core_type = #tpu.core_type<tc>} {
    %c0 = arith.constant 0 : index
    %c0_0 = arith.constant 0 : index
    %0 = vector.load %arg0[%c0, %c0_0] : memref<64x128xf32, #tpu.memory_space<vmem>>, vector<64x128xf32>
    %c0_1 = arith.constant 0 : index
    %c0_2 = arith.constant 0 : index
    %1 = vector.load %arg1[%c0_1, %c0_2] : memref<128x384xf32, #tpu.memory_space<vmem>>, vector<128x384xf32>
    %cst = arith.constant dense<0.000000e+00> : vector<64x384xf32>
    %2 = tpu.matmul %0, %1, %cst {dimension_numbers = #tpu.dot_dimension_numbers<[1], [0], [0], [1], [0, 0, 1, 1], [], []>} : vector<64x128xf32>, vector<128x384xf32>, vector<64x384xf32> -> vector<64x384xf32>
    %c0_3 = arith.constant 0 : index
    %c0_4 = arith.constant 0 : index
    %3 = vector.load %arg2[%c0_3, %c0_4] : memref<1x384xf32, #tpu.memory_space<vmem>>, vector<1x384xf32>
    %4 = vector.broadcast %3 : vector<1x384xf32> to vector<64x384xf32>
    %5 = arith.addf %2, %4 : vector<64x384xf32>
    %c0_5 = arith.constant 0 : index
    %c0_6 = arith.constant 0 : index
    %6 = vector.load %arg10[%c0_5, %c0_6] : memref<64x384xf32, #tpu.memory_space<vmem>>, vector<64x384xf32>
    tpu.vector_store %arg10[%c0_5, %c0_6], %5 {strides = array<i32>} : memref<64x384xf32, #tpu.memory_space<vmem>>, vector<64x384xf32>,
    %c0_7 = arith.constant 0 : index
    %c0_8 = arith.constant 0 : index
    %7 = vector.load %arg3[%c0_7, %c0_8] : memref<128x384xf32, #tpu.memory_space<vmem>>, vector<128x384xf32>
    %c0_9 = arith.constant 0 : index
    %c0_10 = arith.constant 0 : index
    %8 = vector.load %arg4[%c0_9, %c0_10] : memref<1x384xf32, #tpu.memory_space<vmem>>, vector<1x384xf32>
    %cst_11 = arith.constant 0.000000e+00 : f32
    %9 = vector.broadcast %cst_11 : f32 to vector<8x128xf32>
    %c0_12 = arith.constant 0 : index
    %c0_13 = arith.constant 0 : index
    %10 = vector.load %arg10[%c0_12, %c0_13] : memref<64x384xf32, #tpu.memory_space<vmem>>, vector<8x384xf32>
    %cst_14 = arith.constant dense<0.000000e+00> : vector<8x384xf32>
    %11 = tpu.matmul %9, %7, %cst_14 {dimension_numbers = #tpu.dot_dimension_numbers<[1], [0], [0], [1], [0, 0, 1, 1], [], []>} : vector<8x128xf32>, vector<128x384xf32>, vector<8x384xf32> -> vector<8x384xf32>
    %12 = vector.broadcast %8 : vector<1x384xf32> to vector<8x384xf32>
    %13 = arith.addf %11, %12 : vector<8x384xf32>
    %14 = vector.extract_strided_slice %10 {offsets = [0, 0], sizes = [8, 128], strides = [1, 1]} : vector<8x384xf32> to vector<8x128xf32>
    %15 = vector.extract_strided_slice %13 {offsets = [0, 0], sizes = [8, 128], strides = [1, 1]} : vector<8x384xf32> to vector<8x128xf32>
    %16 = arith.addf %14, %15 : vector<8x128xf32>
    %17 = arith.negf %16 : vector<8x128xf32>
    %18 = math.exp %17 : vector<8x128xf32>
    %cst_15 = arith.constant 1.000000e+00 : f32
    %19 = vector.broadcast %cst_15 : f32 to vector<8x128xf32>
    %20 = arith.addf %19, %18 : vector<8x128xf32>
    %21 = arith.divf %19, %20 : vector<8x128xf32>
    %22 = vector.extract_strided_slice %10 {offsets = [0, 128], sizes = [8, 128], strides = [1, 1]} : vector<8x384xf32> to vector<8x128xf32>
    %23 = vector.extract_strided_slice %13 {offsets = [0, 128], sizes = [8, 128], strides = [1, 1]} : vector<8x384xf32> to vector<8x128xf32>
    %24 = arith.addf %22, %23 : vector<8x128xf32>
    %25 = arith.negf %24 : vector<8x128xf32>
    %26 = math.exp %25 : vector<8x128xf32>
    %cst_16 = arith.constant 1.000000e+00 : f32
    %27 = vector.broadcast %cst_16 : f32 to vector<8x128xf32>
    %28 = arith.addf %27, %26 : vector<8x128xf32>
    %29 = arith.divf %27, %28 : vector<8x128xf32>
    %30 = vector.extract_strided_slice %10 {offsets = [0, 256], sizes = [8, 128], strides = [1, 1]} : vector<8x384xf32> to vector<8x128xf32>
    %31 = vector.extract_strided_slice %13 {offsets = [0, 256], sizes = [8, 128], strides = [1, 1]} : vector<8x384xf32> to vector<8x128xf32>
    %32 = arith.mulf %21, %31 : vector<8x128xf32>
    %33 = arith.addf %30, %32 : vector<8x128xf32>
    %34 = math.tanh %33 : vector<8x128xf32>
    %cst_17 = arith.constant 1.000000e+00 : f32
    %35 = vector.broadcast %cst_17 : f32 to vector<8x128xf32>
    %36 = arith.subf %35, %29 : vector<8x128xf32>
    %37 = arith.mulf %36, %34 : vector<8x128xf32>
    %38 = arith.mulf %29, %9 : vector<8x128xf32>
    %39 = arith.addf %37, %38 : vector<8x128xf32>
    %c0_18 = arith.constant 0 : index
    %c0_19 = arith.constant 0 : index
    %40 = vector.load %arg9[%c0_18, %c0_19] : memref<64x128xf32, #tpu.memory_space<vmem>>, vector<8x128xf32>
    tpu.vector_store %arg9[%c0_18, %c0_19], %39 {strides = array<i32>} : memref<64x128xf32, #tpu.memory_space<vmem>>, vector<8x128xf32>,
    %c8 = arith.constant 8 : index
    %c0_20 = arith.constant 0 : index
    %41 = vector.load %arg10[%c8, %c0_20] : memref<64x384xf32, #tpu.memory_space<vmem>>, vector<8x384xf32>
    %cst_21 = arith.constant dense<0.000000e+00> : vector<8x384xf32>
    %42 = tpu.matmul %39, %7, %cst_21 {dimension_numbers = #tpu.dot_dimension_numbers<[1], [0], [0], [1], [0, 0, 1, 1], [], []>} : vector<8x128xf32>, vector<128x384xf32>, vector<8x384xf32> -> vector<8x384xf32>
    %43 = vector.broadcast %8 : vector<1x384xf32> to vector<8x384xf32>
    %44 = arith.addf %42, %43 : vector<8x384xf32>
    %45 = vector.extract_strided_slice %41 {offsets = [0, 0], sizes = [8, 128], strides = [1, 1]} : vector<8x384xf32> to vector<8x128xf32>
    %46 = vector.extract_strided_slice %44 {offsets = [0, 0], sizes = [8, 128], strides = [1, 1]} : vector<8x384xf32> to vector<8x128xf32>
    %47 = arith.addf %45, %46 : vector<8x128xf32>
    %48 = arith.negf %47 : vector<8x128xf32>
    %49 = math.exp %48 : vector<8x128xf32>
    %cst_22 = arith.constant 1.000000e+00 : f32
    %50 = vector.broadcast %cst_22 : f32 to vector<8x128xf32>
    %51 = arith.addf %50, %49 : vector<8x128xf32>
    %52 = arith.divf %50, %51 : vector<8x128xf32>
    %53 = vector.extract_strided_slice %41 {offsets = [0, 128], sizes = [8, 128], strides = [1, 1]} : vector<8x384xf32> to vector<8x128xf32>
    %54 = vector.extract_strided_slice %44 {offsets = [0, 128], sizes = [8, 128], strides = [1, 1]} : vector<8x384xf32> to vector<8x128xf32>
    %55 = arith.addf %53, %54 : vector<8x128xf32>
    %56 = arith.negf %55 : vector<8x128xf32>
    %57 = math.exp %56 : vector<8x128xf32>
    %cst_23 = arith.constant 1.000000e+00 : f32
    %58 = vector.broadcast %cst_23 : f32 to vector<8x128xf32>
    %59 = arith.addf %58, %57 : vector<8x128xf32>
    %60 = arith.divf %58, %59 : vector<8x128xf32>
    %61 = vector.extract_strided_slice %41 {offsets = [0, 256], sizes = [8, 128], strides = [1, 1]} : vector<8x384xf32> to vector<8x128xf32>
    %62 = vector.extract_strided_slice %44 {offsets = [0, 256], sizes = [8, 128], strides = [1, 1]} : vector<8x384xf32> to vector<8x128xf32>
    %63 = arith.mulf %52, %62 : vector<8x128xf32>
    %64 = arith.addf %61, %63 : vector<8x128xf32>
    %65 = math.tanh %64 : vector<8x128xf32>
    %cst_24 = arith.constant 1.000000e+00 : f32
    %66 = vector.broadcast %cst_24 : f32 to vector<8x128xf32>
    %67 = arith.subf %66, %60 : vector<8x128xf32>
    %68 = arith.mulf %67, %65 : vector<8x128xf32>
    %69 = arith.mulf %60, %39 : vector<8x128xf32>
    %70 = arith.addf %68, %69 : vector<8x128xf32>
    %c8_25 = arith.constant 8 : index
    %c0_26 = arith.constant 0 : index
    %71 = vector.load %arg9[%c8_25, %c0_26] : memref<64x128xf32, #tpu.memory_space<vmem>>, vector<8x128xf32>
    tpu.vector_store %arg9[%c8_25, %c0_26], %70 {strides = array<i32>} : memref<64x128xf32, #tpu.memory_space<vmem>>, vector<8x128xf32>,
    %c16 = arith.constant 16 : index
    %c0_27 = arith.constant 0 : index
    %72 = vector.load %arg10[%c16, %c0_27] : memref<64x384xf32, #tpu.memory_space<vmem>>, vector<8x384xf32>
    %cst_28 = arith.constant dense<0.000000e+00> : vector<8x384xf32>
    %73 = tpu.matmul %70, %7, %cst_28 {dimension_numbers = #tpu.dot_dimension_numbers<[1], [0], [0], [1], [0, 0, 1, 1], [], []>} : vector<8x128xf32>, vector<128x384xf32>, vector<8x384xf32> -> vector<8x384xf32>
    %74 = vector.broadcast %8 : vector<1x384xf32> to vector<8x384xf32>
    %75 = arith.addf %73, %74 : vector<8x384xf32>
    %76 = vector.extract_strided_slice %72 {offsets = [0, 0], sizes = [8, 128], strides = [1, 1]} : vector<8x384xf32> to vector<8x128xf32>
    %77 = vector.extract_strided_slice %75 {offsets = [0, 0], sizes = [8, 128], strides = [1, 1]} : vector<8x384xf32> to vector<8x128xf32>
    %78 = arith.addf %76, %77 : vector<8x128xf32>
    %79 = arith.negf %78 : vector<8x128xf32>
    %80 = math.exp %79 : vector<8x128xf32>
    %cst_29 = arith.constant 1.000000e+00 : f32
    %81 = vector.broadcast %cst_29 : f32 to vector<8x128xf32>
    %82 = arith.addf %81, %80 : vector<8x128xf32>
    %83 = arith.divf %81, %82 : vector<8x128xf32>
    %84 = vector.extract_strided_slice %72 {offsets = [0, 128], sizes = [8, 128], strides = [1, 1]} : vector<8x384xf32> to vector<8x128xf32>
    %85 = vector.extract_strided_slice %75 {offsets = [0, 128], sizes = [8, 128], strides = [1, 1]} : vector<8x384xf32> to vector<8x128xf32>
    %86 = arith.addf %84, %85 : vector<8x128xf32>
    %87 = arith.negf %86 : vector<8x128xf32>
    %88 = math.exp %87 : vector<8x128xf32>
    %cst_30 = arith.constant 1.000000e+00 : f32
    %89 = vector.broadcast %cst_30 : f32 to vector<8x128xf32>
    %90 = arith.addf %89, %88 : vector<8x128xf32>
    %91 = arith.divf %89, %90 : vector<8x128xf32>
    %92 = vector.extract_strided_slice %72 {offsets = [0, 256], sizes = [8, 128], strides = [1, 1]} : vector<8x384xf32> to vector<8x128xf32>
    %93 = vector.extract_strided_slice %75 {offsets = [0, 256], sizes = [8, 128], strides = [1, 1]} : vector<8x384xf32> to vector<8x128xf32>
    %94 = arith.mulf %83, %93 : vector<8x128xf32>
    %95 = arith.addf %92, %94 : vector<8x128xf32>
    %96 = math.tanh %95 : vector<8x128xf32>
    %cst_31 = arith.constant 1.000000e+00 : f32
    %97 = vector.broadcast %cst_31 : f32 to vector<8x128xf32>
    %98 = arith.subf %97, %91 : vector<8x128xf32>
    %99 = arith.mulf %98, %96 : vector<8x128xf32>
    %100 = arith.mulf %91, %70 : vector<8x128xf32>
    %101 = arith.addf %99, %100 : vector<8x128xf32>
    %c16_32 = arith.constant 16 : index
    %c0_33 = arith.constant 0 : index
    %102 = vector.load %arg9[%c16_32, %c0_33] : memref<64x128xf32, #tpu.memory_space<vmem>>, vector<8x128xf32>
    tpu.vector_store %arg9[%c16_32, %c0_33], %101 {strides = array<i32>} : memref<64x128xf32, #tpu.memory_space<vmem>>, vector<8x128xf32>,
    %c24 = arith.constant 24 : index
    %c0_34 = arith.constant 0 : index
    %103 = vector.load %arg10[%c24, %c0_34] : memref<64x384xf32, #tpu.memory_space<vmem>>, vector<8x384xf32>
    %cst_35 = arith.constant dense<0.000000e+00> : vector<8x384xf32>
    %104 = tpu.matmul %101, %7, %cst_35 {dimension_numbers = #tpu.dot_dimension_numbers<[1], [0], [0], [1], [0, 0, 1, 1], [], []>} : vector<8x128xf32>, vector<128x384xf32>, vector<8x384xf32> -> vector<8x384xf32>
    %105 = vector.broadcast %8 : vector<1x384xf32> to vector<8x384xf32>
    %106 = arith.addf %104, %105 : vector<8x384xf32>
    %107 = vector.extract_strided_slice %103 {offsets = [0, 0], sizes = [8, 128], strides = [1, 1]} : vector<8x384xf32> to vector<8x128xf32>
    %108 = vector.extract_strided_slice %106 {offsets = [0, 0], sizes = [8, 128], strides = [1, 1]} : vector<8x384xf32> to vector<8x128xf32>
    %109 = arith.addf %107, %108 : vector<8x128xf32>
    %110 = arith.negf %109 : vector<8x128xf32>
    %111 = math.exp %110 : vector<8x128xf32>
    %cst_36 = arith.constant 1.000000e+00 : f32
    %112 = vector.broadcast %cst_36 : f32 to vector<8x128xf32>
    %113 = arith.addf %112, %111 : vector<8x128xf32>
    %114 = arith.divf %112, %113 : vector<8x128xf32>
    %115 = vector.extract_strided_slice %103 {offsets = [0, 128], sizes = [8, 128], strides = [1, 1]} : vector<8x384xf32> to vector<8x128xf32>
    %116 = vector.extract_strided_slice %106 {offsets = [0, 128], sizes = [8, 128], strides = [1, 1]} : vector<8x384xf32> to vector<8x128xf32>
    %117 = arith.addf %115, %116 : vector<8x128xf32>
    %118 = arith.negf %117 : vector<8x128xf32>
    %119 = math.exp %118 : vector<8x128xf32>
    %cst_37 = arith.constant 1.000000e+00 : f32
    %120 = vector.broadcast %cst_37 : f32 to vector<8x128xf32>
    %121 = arith.addf %120, %119 : vector<8x128xf32>
    %122 = arith.divf %120, %121 : vector<8x128xf32>
    %123 = vector.extract_strided_slice %103 {offsets = [0, 256], sizes = [8, 128], strides = [1, 1]} : vector<8x384xf32> to vector<8x128xf32>
    %124 = vector.extract_strided_slice %106 {offsets = [0, 256], sizes = [8, 128], strides = [1, 1]} : vector<8x384xf32> to vector<8x128xf32>
    %125 = arith.mulf %114, %124 : vector<8x128xf32>
    %126 = arith.addf %123, %125 : vector<8x128xf32>
    %127 = math.tanh %126 : vector<8x128xf32>
    %cst_38 = arith.constant 1.000000e+00 : f32
    %128 = vector.broadcast %cst_38 : f32 to vector<8x128xf32>
    %129 = arith.subf %128, %122 : vector<8x128xf32>
    %130 = arith.mulf %129, %127 : vector<8x128xf32>
    %131 = arith.mulf %122, %101 : vector<8x128xf32>
    %132 = arith.addf %130, %131 : vector<8x128xf32>
    %c24_39 = arith.constant 24 : index
    %c0_40 = arith.constant 0 : index
    %133 = vector.load %arg9[%c24_39, %c0_40] : memref<64x128xf32, #tpu.memory_space<vmem>>, vector<8x128xf32>
    tpu.vector_store %arg9[%c24_39, %c0_40], %132 {strides = array<i32>} : memref<64x128xf32, #tpu.memory_space<vmem>>, vector<8x128xf32>,
    %c32 = arith.constant 32 : index
    %c0_41 = arith.constant 0 : index
    %134 = vector.load %arg10[%c32, %c0_41] : memref<64x384xf32, #tpu.memory_space<vmem>>, vector<8x384xf32>
    %cst_42 = arith.constant dense<0.000000e+00> : vector<8x384xf32>
    %135 = tpu.matmul %132, %7, %cst_42 {dimension_numbers = #tpu.dot_dimension_numbers<[1], [0], [0], [1], [0, 0, 1, 1], [], []>} : vector<8x128xf32>, vector<128x384xf32>, vector<8x384xf32> -> vector<8x384xf32>
    %136 = vector.broadcast %8 : vector<1x384xf32> to vector<8x384xf32>
    %137 = arith.addf %135, %136 : vector<8x384xf32>
    %138 = vector.extract_strided_slice %134 {offsets = [0, 0], sizes = [8, 128], strides = [1, 1]} : vector<8x384xf32> to vector<8x128xf32>
    %139 = vector.extract_strided_slice %137 {offsets = [0, 0], sizes = [8, 128], strides = [1, 1]} : vector<8x384xf32> to vector<8x128xf32>
    %140 = arith.addf %138, %139 : vector<8x128xf32>
    %141 = arith.negf %140 : vector<8x128xf32>
    %142 = math.exp %141 : vector<8x128xf32>
    %cst_43 = arith.constant 1.000000e+00 : f32
    %143 = vector.broadcast %cst_43 : f32 to vector<8x128xf32>
    %144 = arith.addf %143, %142 : vector<8x128xf32>
    %145 = arith.divf %143, %144 : vector<8x128xf32>
    %146 = vector.extract_strided_slice %134 {offsets = [0, 128], sizes = [8, 128], strides = [1, 1]} : vector<8x384xf32> to vector<8x128xf32>
    %147 = vector.extract_strided_slice %137 {offsets = [0, 128], sizes = [8, 128], strides = [1, 1]} : vector<8x384xf32> to vector<8x128xf32>
    %148 = arith.addf %146, %147 : vector<8x128xf32>
    %149 = arith.negf %148 : vector<8x128xf32>
    %150 = math.exp %149 : vector<8x128xf32>
    %cst_44 = arith.constant 1.000000e+00 : f32
    %151 = vector.broadcast %cst_44 : f32 to vector<8x128xf32>
    %152 = arith.addf %151, %150 : vector<8x128xf32>
    %153 = arith.divf %151, %152 : vector<8x128xf32>
    %154 = vector.extract_strided_slice %134 {offsets = [0, 256], sizes = [8, 128], strides = [1, 1]} : vector<8x384xf32> to vector<8x128xf32>
    %155 = vector.extract_strided_slice %137 {offsets = [0, 256], sizes = [8, 128], strides = [1, 1]} : vector<8x384xf32> to vector<8x128xf32>
    %156 = arith.mulf %145, %155 : vector<8x128xf32>
    %157 = arith.addf %154, %156 : vector<8x128xf32>
    %158 = math.tanh %157 : vector<8x128xf32>
    %cst_45 = arith.constant 1.000000e+00 : f32
    %159 = vector.broadcast %cst_45 : f32 to vector<8x128xf32>
    %160 = arith.subf %159, %153 : vector<8x128xf32>
    %161 = arith.mulf %160, %158 : vector<8x128xf32>
    %162 = arith.mulf %153, %132 : vector<8x128xf32>
    %163 = arith.addf %161, %162 : vector<8x128xf32>
    %c32_46 = arith.constant 32 : index
    %c0_47 = arith.constant 0 : index
    %164 = vector.load %arg9[%c32_46, %c0_47] : memref<64x128xf32, #tpu.memory_space<vmem>>, vector<8x128xf32>
    tpu.vector_store %arg9[%c32_46, %c0_47], %163 {strides = array<i32>} : memref<64x128xf32, #tpu.memory_space<vmem>>, vector<8x128xf32>,
    %c40 = arith.constant 40 : index
    %c0_48 = arith.constant 0 : index
    %165 = vector.load %arg10[%c40, %c0_48] : memref<64x384xf32, #tpu.memory_space<vmem>>, vector<8x384xf32>
    %cst_49 = arith.constant dense<0.000000e+00> : vector<8x384xf32>
    %166 = tpu.matmul %163, %7, %cst_49 {dimension_numbers = #tpu.dot_dimension_numbers<[1], [0], [0], [1], [0, 0, 1, 1], [], []>} : vector<8x128xf32>, vector<128x384xf32>, vector<8x384xf32> -> vector<8x384xf32>
    %167 = vector.broadcast %8 : vector<1x384xf32> to vector<8x384xf32>
    %168 = arith.addf %166, %167 : vector<8x384xf32>
    %169 = vector.extract_strided_slice %165 {offsets = [0, 0], sizes = [8, 128], strides = [1, 1]} : vector<8x384xf32> to vector<8x128xf32>
    %170 = vector.extract_strided_slice %168 {offsets = [0, 0], sizes = [8, 128], strides = [1, 1]} : vector<8x384xf32> to vector<8x128xf32>
    %171 = arith.addf %169, %170 : vector<8x128xf32>
    %172 = arith.negf %171 : vector<8x128xf32>
    %173 = math.exp %172 : vector<8x128xf32>
    %cst_50 = arith.constant 1.000000e+00 : f32
    %174 = vector.broadcast %cst_50 : f32 to vector<8x128xf32>
    %175 = arith.addf %174, %173 : vector<8x128xf32>
    %176 = arith.divf %174, %175 : vector<8x128xf32>
    %177 = vector.extract_strided_slice %165 {offsets = [0, 128], sizes = [8, 128], strides = [1, 1]} : vector<8x384xf32> to vector<8x128xf32>
    %178 = vector.extract_strided_slice %168 {offsets = [0, 128], sizes = [8, 128], strides = [1, 1]} : vector<8x384xf32> to vector<8x128xf32>
    %179 = arith.addf %177, %178 : vector<8x128xf32>
    %180 = arith.negf %179 : vector<8x128xf32>
    %181 = math.exp %180 : vector<8x128xf32>
    %cst_51 = arith.constant 1.000000e+00 : f32
    %182 = vector.broadcast %cst_51 : f32 to vector<8x128xf32>
    %183 = arith.addf %182, %181 : vector<8x128xf32>
    %184 = arith.divf %182, %183 : vector<8x128xf32>
    %185 = vector.extract_strided_slice %165 {offsets = [0, 256], sizes = [8, 128], strides = [1, 1]} : vector<8x384xf32> to vector<8x128xf32>
    %186 = vector.extract_strided_slice %168 {offsets = [0, 256], sizes = [8, 128], strides = [1, 1]} : vector<8x384xf32> to vector<8x128xf32>
    %187 = arith.mulf %176, %186 : vector<8x128xf32>
    %188 = arith.addf %185, %187 : vector<8x128xf32>
    %189 = math.tanh %188 : vector<8x128xf32>
    %cst_52 = arith.constant 1.000000e+00 : f32
    %190 = vector.broadcast %cst_52 : f32 to vector<8x128xf32>
    %191 = arith.subf %190, %184 : vector<8x128xf32>
    %192 = arith.mulf %191, %189 : vector<8x128xf32>
    %193 = arith.mulf %184, %163 : vector<8x128xf32>
    %194 = arith.addf %192, %193 : vector<8x128xf32>
    %c40_53 = arith.constant 40 : index
    %c0_54 = arith.constant 0 : index
    %195 = vector.load %arg9[%c40_53, %c0_54] : memref<64x128xf32, #tpu.memory_space<vmem>>, vector<8x128xf32>
    tpu.vector_store %arg9[%c40_53, %c0_54], %194 {strides = array<i32>} : memref<64x128xf32, #tpu.memory_space<vmem>>, vector<8x128xf32>,
    %c48 = arith.constant 48 : index
    %c0_55 = arith.constant 0 : index
    %196 = vector.load %arg10[%c48, %c0_55] : memref<64x384xf32, #tpu.memory_space<vmem>>, vector<8x384xf32>
    %cst_56 = arith.constant dense<0.000000e+00> : vector<8x384xf32>
    %197 = tpu.matmul %194, %7, %cst_56 {dimension_numbers = #tpu.dot_dimension_numbers<[1], [0], [0], [1], [0, 0, 1, 1], [], []>} : vector<8x128xf32>, vector<128x384xf32>, vector<8x384xf32> -> vector<8x384xf32>
    %198 = vector.broadcast %8 : vector<1x384xf32> to vector<8x384xf32>
    %199 = arith.addf %197, %198 : vector<8x384xf32>
    %200 = vector.extract_strided_slice %196 {offsets = [0, 0], sizes = [8, 128], strides = [1, 1]} : vector<8x384xf32> to vector<8x128xf32>
    %201 = vector.extract_strided_slice %199 {offsets = [0, 0], sizes = [8, 128], strides = [1, 1]} : vector<8x384xf32> to vector<8x128xf32>
    %202 = arith.addf %200, %201 : vector<8x128xf32>
    %203 = arith.negf %202 : vector<8x128xf32>
    %204 = math.exp %203 : vector<8x128xf32>
    %cst_57 = arith.constant 1.000000e+00 : f32
    %205 = vector.broadcast %cst_57 : f32 to vector<8x128xf32>
    %206 = arith.addf %205, %204 : vector<8x128xf32>
    %207 = arith.divf %205, %206 : vector<8x128xf32>
    %208 = vector.extract_strided_slice %196 {offsets = [0, 128], sizes = [8, 128], strides = [1, 1]} : vector<8x384xf32> to vector<8x128xf32>
    %209 = vector.extract_strided_slice %199 {offsets = [0, 128], sizes = [8, 128], strides = [1, 1]} : vector<8x384xf32> to vector<8x128xf32>
    %210 = arith.addf %208, %209 : vector<8x128xf32>
    %211 = arith.negf %210 : vector<8x128xf32>
    %212 = math.exp %211 : vector<8x128xf32>
    %cst_58 = arith.constant 1.000000e+00 : f32
    %213 = vector.broadcast %cst_58 : f32 to vector<8x128xf32>
    %214 = arith.addf %213, %212 : vector<8x128xf32>
    %215 = arith.divf %213, %214 : vector<8x128xf32>
    %216 = vector.extract_strided_slice %196 {offsets = [0, 256], sizes = [8, 128], strides = [1, 1]} : vector<8x384xf32> to vector<8x128xf32>
    %217 = vector.extract_strided_slice %199 {offsets = [0, 256], sizes = [8, 128], strides = [1, 1]} : vector<8x384xf32> to vector<8x128xf32>
    %218 = arith.mulf %207, %217 : vector<8x128xf32>
    %219 = arith.addf %216, %218 : vector<8x128xf32>
    %220 = math.tanh %219 : vector<8x128xf32>
    %cst_59 = arith.constant 1.000000e+00 : f32
    %221 = vector.broadcast %cst_59 : f32 to vector<8x128xf32>
    %222 = arith.subf %221, %215 : vector<8x128xf32>
    %223 = arith.mulf %222, %220 : vector<8x128xf32>
    %224 = arith.mulf %215, %194 : vector<8x128xf32>
    %225 = arith.addf %223, %224 : vector<8x128xf32>
    %c48_60 = arith.constant 48 : index
    %c0_61 = arith.constant 0 : index
    %226 = vector.load %arg9[%c48_60, %c0_61] : memref<64x128xf32, #tpu.memory_space<vmem>>, vector<8x128xf32>
    tpu.vector_store %arg9[%c48_60, %c0_61], %225 {strides = array<i32>} : memref<64x128xf32, #tpu.memory_space<vmem>>, vector<8x128xf32>,
    %c56 = arith.constant 56 : index
    %c0_62 = arith.constant 0 : index
    %227 = vector.load %arg10[%c56, %c0_62] : memref<64x384xf32, #tpu.memory_space<vmem>>, vector<8x384xf32>
    %cst_63 = arith.constant dense<0.000000e+00> : vector<8x384xf32>
    %228 = tpu.matmul %225, %7, %cst_63 {dimension_numbers = #tpu.dot_dimension_numbers<[1], [0], [0], [1], [0, 0, 1, 1], [], []>} : vector<8x128xf32>, vector<128x384xf32>, vector<8x384xf32> -> vector<8x384xf32>
    %229 = vector.broadcast %8 : vector<1x384xf32> to vector<8x384xf32>
    %230 = arith.addf %228, %229 : vector<8x384xf32>
    %231 = vector.extract_strided_slice %227 {offsets = [0, 0], sizes = [8, 128], strides = [1, 1]} : vector<8x384xf32> to vector<8x128xf32>
    %232 = vector.extract_strided_slice %230 {offsets = [0, 0], sizes = [8, 128], strides = [1, 1]} : vector<8x384xf32> to vector<8x128xf32>
    %233 = arith.addf %231, %232 : vector<8x128xf32>
    %234 = arith.negf %233 : vector<8x128xf32>
    %235 = math.exp %234 : vector<8x128xf32>
    %cst_64 = arith.constant 1.000000e+00 : f32
    %236 = vector.broadcast %cst_64 : f32 to vector<8x128xf32>
    %237 = arith.addf %236, %235 : vector<8x128xf32>
    %238 = arith.divf %236, %237 : vector<8x128xf32>
    %239 = vector.extract_strided_slice %227 {offsets = [0, 128], sizes = [8, 128], strides = [1, 1]} : vector<8x384xf32> to vector<8x128xf32>
    %240 = vector.extract_strided_slice %230 {offsets = [0, 128], sizes = [8, 128], strides = [1, 1]} : vector<8x384xf32> to vector<8x128xf32>
    %241 = arith.addf %239, %240 : vector<8x128xf32>
    %242 = arith.negf %241 : vector<8x128xf32>
    %243 = math.exp %242 : vector<8x128xf32>
    %cst_65 = arith.constant 1.000000e+00 : f32
    %244 = vector.broadcast %cst_65 : f32 to vector<8x128xf32>
    %245 = arith.addf %244, %243 : vector<8x128xf32>
    %246 = arith.divf %244, %245 : vector<8x128xf32>
    %247 = vector.extract_strided_slice %227 {offsets = [0, 256], sizes = [8, 128], strides = [1, 1]} : vector<8x384xf32> to vector<8x128xf32>
    %248 = vector.extract_strided_slice %230 {offsets = [0, 256], sizes = [8, 128], strides = [1, 1]} : vector<8x384xf32> to vector<8x128xf32>
    %249 = arith.mulf %238, %248 : vector<8x128xf32>
    %250 = arith.addf %247, %249 : vector<8x128xf32>
    %251 = math.tanh %250 : vector<8x128xf32>
    %cst_66 = arith.constant 1.000000e+00 : f32
    %252 = vector.broadcast %cst_66 : f32 to vector<8x128xf32>
    %253 = arith.subf %252, %246 : vector<8x128xf32>
    %254 = arith.mulf %253, %251 : vector<8x128xf32>
    %255 = arith.mulf %246, %225 : vector<8x128xf32>
    %256 = arith.addf %254, %255 : vector<8x128xf32>
    %c56_67 = arith.constant 56 : index
    %c0_68 = arith.constant 0 : index
    %257 = vector.load %arg9[%c56_67, %c0_68] : memref<64x128xf32, #tpu.memory_space<vmem>>, vector<8x128xf32>
    tpu.vector_store %arg9[%c56_67, %c0_68], %256 {strides = array<i32>} : memref<64x128xf32, #tpu.memory_space<vmem>>, vector<8x128xf32>,
    %c0_69 = arith.constant 0 : index
    %c0_70 = arith.constant 0 : index
    %258 = vector.load %arg9[%c0_69, %c0_70] : memref<64x128xf32, #tpu.memory_space<vmem>>, vector<64x128xf32>
    %cst_71 = arith.constant 1.000000e+00 : f32
    %259 = vector.broadcast %cst_71 : f32 to vector<64x128xf32>
    %260 = arith.subf %258, %259 : vector<64x128xf32>
    %cst_72 = arith.constant 0.000000e+00 : f32
    %261 = vector.broadcast %cst_72 : f32 to vector<64x128xf32>
    %262 = arith.cmpf ogt, %260, %261 : vector<64x128xf32>
    %263 = arith.extui %262 : vector<64x128xi1> to vector<64x128xi32>
    %264 = arith.sitofp %263 : vector<64x128xi32> to vector<64x128xf32>
    %c0_73 = arith.constant 0 : index
    %c0_74 = arith.constant 0 : index
    %265 = vector.load %arg5[%c0_73, %c0_74] : memref<128x128xf32, #tpu.memory_space<vmem>>, vector<128x128xf32>
    %cst_75 = arith.constant dense<0.000000e+00> : vector<64x128xf32>
    %266 = tpu.matmul %264, %265, %cst_75 {dimension_numbers = #tpu.dot_dimension_numbers<[1], [0], [0], [1], [0, 0, 1, 1], [], []>} : vector<64x128xf32>, vector<128x128xf32>, vector<64x128xf32> -> vector<64x128xf32>
    %c0_76 = arith.constant 0 : index
    %c0_77 = arith.constant 0 : index
    %267 = vector.load %arg6[%c0_76, %c0_77] : memref<1x128xf32, #tpu.memory_space<vmem>>, vector<1x128xf32>
    %268 = vector.broadcast %267 : vector<1x128xf32> to vector<64x128xf32>
    %269 = arith.addf %266, %268 : vector<64x128xf32>
    %cst_78 = arith.constant 0.000000e+00 : f32
    %270 = vector.broadcast %cst_78 : f32 to vector<8x128xf32>
    %271 = vector.extract_strided_slice %269 {offsets = [0, 0], sizes = [8, 128], strides = [1, 1]} : vector<64x128xf32> to vector<8x128xf32>
    %cst_79 = arith.constant 1.000000e+00 : f32
    %272 = vector.broadcast %cst_79 : f32 to vector<8x128xf32>
    %273 = arith.subf %270, %272 : vector<8x128xf32>
    %cst_80 = arith.constant 0.000000e+00 : f32
    %274 = vector.broadcast %cst_80 : f32 to vector<8x128xf32>
    %275 = arith.cmpf ogt, %273, %274 : vector<8x128xf32>
    %276 = arith.extui %275 : vector<8x128xi1> to vector<8x128xi32>
    %277 = arith.sitofp %276 : vector<8x128xi32> to vector<8x128xf32>
    %cst_81 = arith.constant 0.949999988 : f32
    %278 = vector.broadcast %cst_81 : f32 to vector<8x128xf32>
    %279 = arith.mulf %278, %270 : vector<8x128xf32>
    %280 = arith.addf %279, %271 : vector<8x128xf32>
    %cst_82 = arith.constant 1.000000e+00 : f32
    %281 = vector.broadcast %cst_82 : f32 to vector<8x128xf32>
    %282 = arith.mulf %277, %281 : vector<8x128xf32>
    %283 = arith.subf %280, %282 : vector<8x128xf32>
    %cst_83 = arith.constant 1.000000e+00 : f32
    %284 = vector.broadcast %cst_83 : f32 to vector<8x128xf32>
    %285 = arith.subf %283, %284 : vector<8x128xf32>
    %cst_84 = arith.constant 0.000000e+00 : f32
    %286 = vector.broadcast %cst_84 : f32 to vector<8x128xf32>
    %287 = arith.cmpf ogt, %285, %286 : vector<8x128xf32>
    %288 = arith.extui %287 : vector<8x128xi1> to vector<8x128xi32>
    %289 = arith.sitofp %288 : vector<8x128xi32> to vector<8x128xf32>
    %c0_85 = arith.constant 0 : index
    %c0_86 = arith.constant 0 : index
    %290 = vector.load %arg7[%c0_85, %c0_86] : memref<64x128xf32, #tpu.memory_space<vmem>>, vector<8x128xf32>
    tpu.vector_store %arg7[%c0_85, %c0_86], %289 {strides = array<i32>} : memref<64x128xf32, #tpu.memory_space<vmem>>, vector<8x128xf32>,
    %c0_87 = arith.constant 0 : index
    %c0_88 = arith.constant 0 : index
    %291 = vector.load %arg8[%c0_87, %c0_88] : memref<64x128xf32, #tpu.memory_space<vmem>>, vector<8x128xf32>
    tpu.vector_store %arg8[%c0_87, %c0_88], %283 {strides = array<i32>} : memref<64x128xf32, #tpu.memory_space<vmem>>, vector<8x128xf32>,
    %292 = vector.extract_strided_slice %269 {offsets = [8, 0], sizes = [8, 128], strides = [1, 1]} : vector<64x128xf32> to vector<8x128xf32>
    %cst_89 = arith.constant 1.000000e+00 : f32
    %293 = vector.broadcast %cst_89 : f32 to vector<8x128xf32>
    %294 = arith.subf %283, %293 : vector<8x128xf32>
    %cst_90 = arith.constant 0.000000e+00 : f32
    %295 = vector.broadcast %cst_90 : f32 to vector<8x128xf32>
    %296 = arith.cmpf ogt, %294, %295 : vector<8x128xf32>
    %297 = arith.extui %296 : vector<8x128xi1> to vector<8x128xi32>
    %298 = arith.sitofp %297 : vector<8x128xi32> to vector<8x128xf32>
    %cst_91 = arith.constant 0.949999988 : f32
    %299 = vector.broadcast %cst_91 : f32 to vector<8x128xf32>
    %300 = arith.mulf %299, %283 : vector<8x128xf32>
    %301 = arith.addf %300, %292 : vector<8x128xf32>
    %cst_92 = arith.constant 1.000000e+00 : f32
    %302 = vector.broadcast %cst_92 : f32 to vector<8x128xf32>
    %303 = arith.mulf %298, %302 : vector<8x128xf32>
    %304 = arith.subf %301, %303 : vector<8x128xf32>
    %cst_93 = arith.constant 1.000000e+00 : f32
    %305 = vector.broadcast %cst_93 : f32 to vector<8x128xf32>
    %306 = arith.subf %304, %305 : vector<8x128xf32>
    %cst_94 = arith.constant 0.000000e+00 : f32
    %307 = vector.broadcast %cst_94 : f32 to vector<8x128xf32>
    %308 = arith.cmpf ogt, %306, %307 : vector<8x128xf32>
    %309 = arith.extui %308 : vector<8x128xi1> to vector<8x128xi32>
    %310 = arith.sitofp %309 : vector<8x128xi32> to vector<8x128xf32>
    %c8_95 = arith.constant 8 : index
    %c0_96 = arith.constant 0 : index
    %311 = vector.load %arg7[%c8_95, %c0_96] : memref<64x128xf32, #tpu.memory_space<vmem>>, vector<8x128xf32>
    tpu.vector_store %arg7[%c8_95, %c0_96], %310 {strides = array<i32>} : memref<64x128xf32, #tpu.memory_space<vmem>>, vector<8x128xf32>,
    %c8_97 = arith.constant 8 : index
    %c0_98 = arith.constant 0 : index
    %312 = vector.load %arg8[%c8_97, %c0_98] : memref<64x128xf32, #tpu.memory_space<vmem>>, vector<8x128xf32>
    tpu.vector_store %arg8[%c8_97, %c0_98], %304 {strides = array<i32>} : memref<64x128xf32, #tpu.memory_space<vmem>>, vector<8x128xf32>,
    %313 = vector.extract_strided_slice %269 {offsets = [16, 0], sizes = [8, 128], strides = [1, 1]} : vector<64x128xf32> to vector<8x128xf32>
    %cst_99 = arith.constant 1.000000e+00 : f32
    %314 = vector.broadcast %cst_99 : f32 to vector<8x128xf32>
    %315 = arith.subf %304, %314 : vector<8x128xf32>
    %cst_100 = arith.constant 0.000000e+00 : f32
    %316 = vector.broadcast %cst_100 : f32 to vector<8x128xf32>
    %317 = arith.cmpf ogt, %315, %316 : vector<8x128xf32>
    %318 = arith.extui %317 : vector<8x128xi1> to vector<8x128xi32>
    %319 = arith.sitofp %318 : vector<8x128xi32> to vector<8x128xf32>
    %cst_101 = arith.constant 0.949999988 : f32
    %320 = vector.broadcast %cst_101 : f32 to vector<8x128xf32>
    %321 = arith.mulf %320, %304 : vector<8x128xf32>
    %322 = arith.addf %321, %313 : vector<8x128xf32>
    %cst_102 = arith.constant 1.000000e+00 : f32
    %323 = vector.broadcast %cst_102 : f32 to vector<8x128xf32>
    %324 = arith.mulf %319, %323 : vector<8x128xf32>
    %325 = arith.subf %322, %324 : vector<8x128xf32>
    %cst_103 = arith.constant 1.000000e+00 : f32
    %326 = vector.broadcast %cst_103 : f32 to vector<8x128xf32>
    %327 = arith.subf %325, %326 : vector<8x128xf32>
    %cst_104 = arith.constant 0.000000e+00 : f32
    %328 = vector.broadcast %cst_104 : f32 to vector<8x128xf32>
    %329 = arith.cmpf ogt, %327, %328 : vector<8x128xf32>
    %330 = arith.extui %329 : vector<8x128xi1> to vector<8x128xi32>
    %331 = arith.sitofp %330 : vector<8x128xi32> to vector<8x128xf32>
    %c16_105 = arith.constant 16 : index
    %c0_106 = arith.constant 0 : index
    %332 = vector.load %arg7[%c16_105, %c0_106] : memref<64x128xf32, #tpu.memory_space<vmem>>, vector<8x128xf32>
    tpu.vector_store %arg7[%c16_105, %c0_106], %331 {strides = array<i32>} : memref<64x128xf32, #tpu.memory_space<vmem>>, vector<8x128xf32>,
    %c16_107 = arith.constant 16 : index
    %c0_108 = arith.constant 0 : index
    %333 = vector.load %arg8[%c16_107, %c0_108] : memref<64x128xf32, #tpu.memory_space<vmem>>, vector<8x128xf32>
    tpu.vector_store %arg8[%c16_107, %c0_108], %325 {strides = array<i32>} : memref<64x128xf32, #tpu.memory_space<vmem>>, vector<8x128xf32>,
    %334 = vector.extract_strided_slice %269 {offsets = [24, 0], sizes = [8, 128], strides = [1, 1]} : vector<64x128xf32> to vector<8x128xf32>
    %cst_109 = arith.constant 1.000000e+00 : f32
    %335 = vector.broadcast %cst_109 : f32 to vector<8x128xf32>
    %336 = arith.subf %325, %335 : vector<8x128xf32>
    %cst_110 = arith.constant 0.000000e+00 : f32
    %337 = vector.broadcast %cst_110 : f32 to vector<8x128xf32>
    %338 = arith.cmpf ogt, %336, %337 : vector<8x128xf32>
    %339 = arith.extui %338 : vector<8x128xi1> to vector<8x128xi32>
    %340 = arith.sitofp %339 : vector<8x128xi32> to vector<8x128xf32>
    %cst_111 = arith.constant 0.949999988 : f32
    %341 = vector.broadcast %cst_111 : f32 to vector<8x128xf32>
    %342 = arith.mulf %341, %325 : vector<8x128xf32>
    %343 = arith.addf %342, %334 : vector<8x128xf32>
    %cst_112 = arith.constant 1.000000e+00 : f32
    %344 = vector.broadcast %cst_112 : f32 to vector<8x128xf32>
    %345 = arith.mulf %340, %344 : vector<8x128xf32>
    %346 = arith.subf %343, %345 : vector<8x128xf32>
    %cst_113 = arith.constant 1.000000e+00 : f32
    %347 = vector.broadcast %cst_113 : f32 to vector<8x128xf32>
    %348 = arith.subf %346, %347 : vector<8x128xf32>
    %cst_114 = arith.constant 0.000000e+00 : f32
    %349 = vector.broadcast %cst_114 : f32 to vector<8x128xf32>
    %350 = arith.cmpf ogt, %348, %349 : vector<8x128xf32>
    %351 = arith.extui %350 : vector<8x128xi1> to vector<8x128xi32>
    %352 = arith.sitofp %351 : vector<8x128xi32> to vector<8x128xf32>
    %c24_115 = arith.constant 24 : index
    %c0_116 = arith.constant 0 : index
    %353 = vector.load %arg7[%c24_115, %c0_116] : memref<64x128xf32, #tpu.memory_space<vmem>>, vector<8x128xf32>
    tpu.vector_store %arg7[%c24_115, %c0_116], %352 {strides = array<i32>} : memref<64x128xf32, #tpu.memory_space<vmem>>, vector<8x128xf32>,
    %c24_117 = arith.constant 24 : index
    %c0_118 = arith.constant 0 : index
    %354 = vector.load %arg8[%c24_117, %c0_118] : memref<64x128xf32, #tpu.memory_space<vmem>>, vector<8x128xf32>
    tpu.vector_store %arg8[%c24_117, %c0_118], %346 {strides = array<i32>} : memref<64x128xf32, #tpu.memory_space<vmem>>, vector<8x128xf32>,
    %355 = vector.extract_strided_slice %269 {offsets = [32, 0], sizes = [8, 128], strides = [1, 1]} : vector<64x128xf32> to vector<8x128xf32>
    %cst_119 = arith.constant 1.000000e+00 : f32
    %356 = vector.broadcast %cst_119 : f32 to vector<8x128xf32>
    %357 = arith.subf %346, %356 : vector<8x128xf32>
    %cst_120 = arith.constant 0.000000e+00 : f32
    %358 = vector.broadcast %cst_120 : f32 to vector<8x128xf32>
    %359 = arith.cmpf ogt, %357, %358 : vector<8x128xf32>
    %360 = arith.extui %359 : vector<8x128xi1> to vector<8x128xi32>
    %361 = arith.sitofp %360 : vector<8x128xi32> to vector<8x128xf32>
    %cst_121 = arith.constant 0.949999988 : f32
    %362 = vector.broadcast %cst_121 : f32 to vector<8x128xf32>
    %363 = arith.mulf %362, %346 : vector<8x128xf32>
    %364 = arith.addf %363, %355 : vector<8x128xf32>
    %cst_122 = arith.constant 1.000000e+00 : f32
    %365 = vector.broadcast %cst_122 : f32 to vector<8x128xf32>
    %366 = arith.mulf %361, %365 : vector<8x128xf32>
    %367 = arith.subf %364, %366 : vector<8x128xf32>
    %cst_123 = arith.constant 1.000000e+00 : f32
    %368 = vector.broadcast %cst_123 : f32 to vector<8x128xf32>
    %369 = arith.subf %367, %368 : vector<8x128xf32>
    %cst_124 = arith.constant 0.000000e+00 : f32
    %370 = vector.broadcast %cst_124 : f32 to vector<8x128xf32>
    %371 = arith.cmpf ogt, %369, %370 : vector<8x128xf32>
    %372 = arith.extui %371 : vector<8x128xi1> to vector<8x128xi32>
    %373 = arith.sitofp %372 : vector<8x128xi32> to vector<8x128xf32>
    %c32_125 = arith.constant 32 : index
    %c0_126 = arith.constant 0 : index
    %374 = vector.load %arg7[%c32_125, %c0_126] : memref<64x128xf32, #tpu.memory_space<vmem>>, vector<8x128xf32>
    tpu.vector_store %arg7[%c32_125, %c0_126], %373 {strides = array<i32>} : memref<64x128xf32, #tpu.memory_space<vmem>>, vector<8x128xf32>,
    %c32_127 = arith.constant 32 : index
    %c0_128 = arith.constant 0 : index
    %375 = vector.load %arg8[%c32_127, %c0_128] : memref<64x128xf32, #tpu.memory_space<vmem>>, vector<8x128xf32>
    tpu.vector_store %arg8[%c32_127, %c0_128], %367 {strides = array<i32>} : memref<64x128xf32, #tpu.memory_space<vmem>>, vector<8x128xf32>,
    %376 = vector.extract_strided_slice %269 {offsets = [40, 0], sizes = [8, 128], strides = [1, 1]} : vector<64x128xf32> to vector<8x128xf32>
    %cst_129 = arith.constant 1.000000e+00 : f32
    %377 = vector.broadcast %cst_129 : f32 to vector<8x128xf32>
    %378 = arith.subf %367, %377 : vector<8x128xf32>
    %cst_130 = arith.constant 0.000000e+00 : f32
    %379 = vector.broadcast %cst_130 : f32 to vector<8x128xf32>
    %380 = arith.cmpf ogt, %378, %379 : vector<8x128xf32>
    %381 = arith.extui %380 : vector<8x128xi1> to vector<8x128xi32>
    %382 = arith.sitofp %381 : vector<8x128xi32> to vector<8x128xf32>
    %cst_131 = arith.constant 0.949999988 : f32
    %383 = vector.broadcast %cst_131 : f32 to vector<8x128xf32>
    %384 = arith.mulf %383, %367 : vector<8x128xf32>
    %385 = arith.addf %384, %376 : vector<8x128xf32>
    %cst_132 = arith.constant 1.000000e+00 : f32
    %386 = vector.broadcast %cst_132 : f32 to vector<8x128xf32>
    %387 = arith.mulf %382, %386 : vector<8x128xf32>
    %388 = arith.subf %385, %387 : vector<8x128xf32>
    %cst_133 = arith.constant 1.000000e+00 : f32
    %389 = vector.broadcast %cst_133 : f32 to vector<8x128xf32>
    %390 = arith.subf %388, %389 : vector<8x128xf32>
    %cst_134 = arith.constant 0.000000e+00 : f32
    %391 = vector.broadcast %cst_134 : f32 to vector<8x128xf32>
    %392 = arith.cmpf ogt, %390, %391 : vector<8x128xf32>
    %393 = arith.extui %392 : vector<8x128xi1> to vector<8x128xi32>
    %394 = arith.sitofp %393 : vector<8x128xi32> to vector<8x128xf32>
    %c40_135 = arith.constant 40 : index
    %c0_136 = arith.constant 0 : index
    %395 = vector.load %arg7[%c40_135, %c0_136] : memref<64x128xf32, #tpu.memory_space<vmem>>, vector<8x128xf32>
    tpu.vector_store %arg7[%c40_135, %c0_136], %394 {strides = array<i32>} : memref<64x128xf32, #tpu.memory_space<vmem>>, vector<8x128xf32>,
    %c40_137 = arith.constant 40 : index
    %c0_138 = arith.constant 0 : index
    %396 = vector.load %arg8[%c40_137, %c0_138] : memref<64x128xf32, #tpu.memory_space<vmem>>, vector<8x128xf32>
    tpu.vector_store %arg8[%c40_137, %c0_138], %388 {strides = array<i32>} : memref<64x128xf32, #tpu.memory_space<vmem>>, vector<8x128xf32>,
    %397 = vector.extract_strided_slice %269 {offsets = [48, 0], sizes = [8, 128], strides = [1, 1]} : vector<64x128xf32> to vector<8x128xf32>
    %cst_139 = arith.constant 1.000000e+00 : f32
    %398 = vector.broadcast %cst_139 : f32 to vector<8x128xf32>
    %399 = arith.subf %388, %398 : vector<8x128xf32>
    %cst_140 = arith.constant 0.000000e+00 : f32
    %400 = vector.broadcast %cst_140 : f32 to vector<8x128xf32>
    %401 = arith.cmpf ogt, %399, %400 : vector<8x128xf32>
    %402 = arith.extui %401 : vector<8x128xi1> to vector<8x128xi32>
    %403 = arith.sitofp %402 : vector<8x128xi32> to vector<8x128xf32>
    %cst_141 = arith.constant 0.949999988 : f32
    %404 = vector.broadcast %cst_141 : f32 to vector<8x128xf32>
    %405 = arith.mulf %404, %388 : vector<8x128xf32>
    %406 = arith.addf %405, %397 : vector<8x128xf32>
    %cst_142 = arith.constant 1.000000e+00 : f32
    %407 = vector.broadcast %cst_142 : f32 to vector<8x128xf32>
    %408 = arith.mulf %403, %407 : vector<8x128xf32>
    %409 = arith.subf %406, %408 : vector<8x128xf32>
    %cst_143 = arith.constant 1.000000e+00 : f32
    %410 = vector.broadcast %cst_143 : f32 to vector<8x128xf32>
    %411 = arith.subf %409, %410 : vector<8x128xf32>
    %cst_144 = arith.constant 0.000000e+00 : f32
    %412 = vector.broadcast %cst_144 : f32 to vector<8x128xf32>
    %413 = arith.cmpf ogt, %411, %412 : vector<8x128xf32>
    %414 = arith.extui %413 : vector<8x128xi1> to vector<8x128xi32>
    %415 = arith.sitofp %414 : vector<8x128xi32> to vector<8x128xf32>
    %c48_145 = arith.constant 48 : index
    %c0_146 = arith.constant 0 : index
    %416 = vector.load %arg7[%c48_145, %c0_146] : memref<64x128xf32, #tpu.memory_space<vmem>>, vector<8x128xf32>
    tpu.vector_store %arg7[%c48_145, %c0_146], %415 {strides = array<i32>} : memref<64x128xf32, #tpu.memory_space<vmem>>, vector<8x128xf32>,
    %c48_147 = arith.constant 48 : index
    %c0_148 = arith.constant 0 : index
    %417 = vector.load %arg8[%c48_147, %c0_148] : memref<64x128xf32, #tpu.memory_space<vmem>>, vector<8x128xf32>
    tpu.vector_store %arg8[%c48_147, %c0_148], %409 {strides = array<i32>} : memref<64x128xf32, #tpu.memory_space<vmem>>, vector<8x128xf32>,
    %418 = vector.extract_strided_slice %269 {offsets = [56, 0], sizes = [8, 128], strides = [1, 1]} : vector<64x128xf32> to vector<8x128xf32>
    %cst_149 = arith.constant 1.000000e+00 : f32
    %419 = vector.broadcast %cst_149 : f32 to vector<8x128xf32>
    %420 = arith.subf %409, %419 : vector<8x128xf32>
    %cst_150 = arith.constant 0.000000e+00 : f32
    %421 = vector.broadcast %cst_150 : f32 to vector<8x128xf32>
    %422 = arith.cmpf ogt, %420, %421 : vector<8x128xf32>
    %423 = arith.extui %422 : vector<8x128xi1> to vector<8x128xi32>
    %424 = arith.sitofp %423 : vector<8x128xi32> to vector<8x128xf32>
    %cst_151 = arith.constant 0.949999988 : f32
    %425 = vector.broadcast %cst_151 : f32 to vector<8x128xf32>
    %426 = arith.mulf %425, %409 : vector<8x128xf32>
    %427 = arith.addf %426, %418 : vector<8x128xf32>
    %cst_152 = arith.constant 1.000000e+00 : f32
    %428 = vector.broadcast %cst_152 : f32 to vector<8x128xf32>
    %429 = arith.mulf %424, %428 : vector<8x128xf32>
    %430 = arith.subf %427, %429 : vector<8x128xf32>
    %cst_153 = arith.constant 1.000000e+00 : f32
    %431 = vector.broadcast %cst_153 : f32 to vector<8x128xf32>
    %432 = arith.subf %430, %431 : vector<8x128xf32>
    %cst_154 = arith.constant 0.000000e+00 : f32
    %433 = vector.broadcast %cst_154 : f32 to vector<8x128xf32>
    %434 = arith.cmpf ogt, %432, %433 : vector<8x128xf32>
    %435 = arith.extui %434 : vector<8x128xi1> to vector<8x128xi32>
    %436 = arith.sitofp %435 : vector<8x128xi32> to vector<8x128xf32>
    %c56_155 = arith.constant 56 : index
    %c0_156 = arith.constant 0 : index
    %437 = vector.load %arg7[%c56_155, %c0_156] : memref<64x128xf32, #tpu.memory_space<vmem>>, vector<8x128xf32>
    tpu.vector_store %arg7[%c56_155, %c0_156], %436 {strides = array<i32>} : memref<64x128xf32, #tpu.memory_space<vmem>>, vector<8x128xf32>,
    %c56_157 = arith.constant 56 : index
    %c0_158 = arith.constant 0 : index
    %438 = vector.load %arg8[%c56_157, %c0_158] : memref<64x128xf32, #tpu.memory_space<vmem>>, vector<8x128xf32>
    tpu.vector_store %arg8[%c56_157, %c0_158], %430 {strides = array<i32>} : memref<64x128xf32, #tpu.memory_space<vmem>>, vector<8x128xf32>,
    return
  }
}

</mosaic_0001>

<bundles_post_ra>
// kernel: _sgru_net_apply.1
= control target key start
LH: loop header
LB: loop body
LE: loop exit
PB: predicated region body
PF: predicated region fallthrough
CT: control target
= control target key end

     0   :  { %15 = vsyncpa [#allocation4], 0  ;;  %s3318_s30 = smov [#allocation3]   ;;  %s4288_s0 = inlined_call_operand.vmem [shape: f32[64,128], index: 0, kind: input, shape index: {}]   ;;  %s4289_s1 = inlined_call_operand.vmem [shape: f32[128,384], index: 1, kind: input, shape index: {}]   ;;  %s4290_s2 = inlined_call_operand.vmem [shape: f32[1,384], index: 2, kind: input, shape index: {}]   ;;  %s4291_s3 = inlined_call_operand.vmem [shape: f32[128,384], index: 3, kind: input, shape index: {}]   ;;  %s4292_s4 = inlined_call_operand.vmem [shape: f32[1,384], index: 4, kind: input, shape index: {}]   ;;  %s4293_s5 = inlined_call_operand.hbm [shape: f32[128,128], index: 5, kind: input, shape index: {}]   ;;  %s4294_s6 = inlined_call_operand.vmem [shape: f32[1,128], index: 6, kind: input, shape index: {}]   ;;  %s4295_s7 = inlined_call_operand.vmem [shape: f32[64,128], index: 7, kind: output, shape index: {0}]   ;;  %s4296_s8 = inlined_call_operand.vmem [shape: f32[64,128], index: 8, kind: output, shape index: {1}]   ;;  %s4297_s9 = inlined_call_operand.vmem [shape: f32[64,128], index: 9, kind: output, shape index: {2}]  }
   0x1   :  { %s31_s10 = sshll.u32 %s3318_s30, 4  ;;  %s3294_s13 = scalar_lea.hbm %s4293_s5, 2048  ;;  %s32_s10 = int_to_ptr.vmem [resolvable:$true] %s31_s10 }
   0x2   :  { %p3295_p0 = scmp.ne.s32.totalorder %s4293_s5, %s3294_s13  ;;  %p3298_p1 = scmp.lt.u32.totalorder %s3294_s13, %s4293_s5 }
   0x4   :  { %p3300_p2 = pnand %p3298_p1, %p3295_p0 }
   0x6   :  { %3303 = shalt.err (!%p3300_p2)
}
   0x7   :  { %s3304_s18 = scalar_lea.vmem %s32_s10, 2048  ;;  %p3309_p4 = scmp.lt.s32.totalorder %s32_s10, %s32_s10 }
   0x8   :  { %p3305_p3 = scmp.ne.s32.totalorder %s32_s10, %s3304_s18  ;;  %p3310_p5 = scmp.lt.s32.totalorder %s3304_s18, %s3304_s18 }
   0xa   :  { %p3311_p6 = por %p3310_p5, %p3309_p4 }
   0xc   :  { %p3312_p7 = pnand %p3311_p6, %p3305_p3 }
   0xe   :  { %3315 = shalt.err (!%p3312_p7)
}
   0xf   :  { %s3319_s19 = smov 128   ;;  %s3320_s20 = smov 8  }
  0x10   :  { %37 = dma.hbm_to_vmem [thread:$0]  %s4293_s5, 2048, %s32_s10, [#allocation4], %s3319_s19, %s3319_s19, %s3320_s20  }
  0x11   :  { %3316 = dma.done.wait [#allocation4], 2048  }
  0x12   :  { %3317 = vsyncadd [#allocation4], 4294965248  ;;  %v4298_v0 = vmov 0.0   ;;  %v52_v1 = vld [vmem:[%s4289_s1 + $0x8] sm:$0xff]  ;;  %v55_v2 = vld [vmem:[%s4289_s1 + $0x20] sm:$0xff]  ;;  %vm3323_vm0 = vmmov 0  }
  0x13   :  { %180 = vmatprep.mubr.f32.mxu1 %v4298_v0  ;;  %490 = vmatprep.mubr.f32.mxu0 %v4298_v0  ;;  %v51_v3 = vld [vmem:[%s4289_s1] sm:$0xff]  ;;  %v2615_v4 = vpack.c.bf16 %v55_v2, %v52_v1  ;;  %v54_v5 = vld [vmem:[%s4289_s1 + $0x18] sm:$0xff]  ;;  %v61_v7 = vld [vmem:[%s4289_s1 + $0x50] sm:$0xff] }
  0x14   :  { %v58_v6 = vld [vmem:[%s4289_s1 + $0x38] sm:$0xff]  ;;  %v2617_v8 = vpack.c.bf16 %v54_v5, %v51_v3  ;;  %v359_v10 = vld [vmem:[%s4291_s3 + $0x8] sm:$0xff]  ;;  %v362_v11 = vld [vmem:[%s4291_s3 + $0x20] sm:$0xff] }
  0x15   :  { %v2619_v9 = vpack.c.bf16 %v61_v7, %v58_v6  ;;  %v57_v12 = vld [vmem:[%s4289_s1 + $0x30] sm:$0xff]  ;;  %2616 = vmatprep.subr.bf16.mxu1 %v2615_v4  ;;  %v3416_v13 = vpack.c.bf16 %v362_v11, %v359_v10  ;;  %v60_v14 = vld [vmem:[%s4289_s1 + $0x48] sm:$0xff]  ;;  %v358_v15 = vld [vmem:[%s4291_s3] sm:$0xff] }
  0x16   :  { %v361_v16 = vld [vmem:[%s4291_s3 + $0x18] sm:$0xff]  ;;  %2618 = vmatpush1.bf16.msra.mxu1 %v2617_v8  ;;  %v2621_v17 = vpack.c.bf16 %v60_v14, %v57_v12  ;;  %v64_v19 = vld [vmem:[%s4289_s1 + $0x68] sm:$0xff]  ;;  %v67_v20 = vld [vmem:[%s4289_s1 + $0x80] sm:$0xff] }
  0x17   :  { %v3427_v18 = vpack.c.bf16 %v361_v16, %v358_v15  ;;  %v365_v21 = vld [vmem:[%s4291_s3 + $0x38] sm:$0xff]  ;;  %2620 = vmatprep.subr.bf16.mxu1 %v2619_v9  ;;  %2680 = vmatprep.subr.bf16.mxu0 %v3416_v13  ;;  %v2623_v22 = vpack.c.bf16 %v67_v20, %v64_v19  ;;  %v368_v23 = vld [vmem:[%s4291_s3 + $0x50] sm:$0xff]  ;;  %v63_v24 = vld [vmem:[%s4289_s1 + $0x60] sm:$0xff] }
  0x18   :  { %v66_v25 = vld [vmem:[%s4289_s1 + $0x78] sm:$0xff]  ;;  %v3449_v26 = vpack.c.bf16 %v368_v23, %v365_v21  ;;  %v364_v27 = vld [vmem:[%s4291_s3 + $0x30] sm:$0xff]  ;;  %v367_v28 = vld [vmem:[%s4291_s3 + $0x48] sm:$0xff] }
  0x19   :  { %2682 = vmatpush1.bf16.msra.mxu0 %v3427_v18  ;;  %v70_v29 = vld [vmem:[%s4289_s1 + $0x98] sm:$0xff]  ;;  %v3460_v30 = vpack.c.bf16 %v367_v28, %v364_v27  ;;  %v73_v31 = vld [vmem:[%s4289_s1 + $0xb0] sm:$0xff]  ;;  %v371_v32 = vld [vmem:[%s4291_s3 + $0x68] sm:$0xff]  ;;  %v2625_v34 = vpack.c.bf16 %v66_v25, %v63_v24 }
  0x1a   :  { %v374_v33 = vld [vmem:[%s4291_s3 + $0x80] sm:$0xff]  ;;  %2622 = vmatpush1.bf16.msra.mxu1 %v2621_v17  ;;  %2684 = vmatprep.subr.bf16.mxu0 %v3449_v26  ;;  %v69_v36 = vld [vmem:[%s4289_s1 + $0x90] sm:$0xff]  ;;  %v2627_v38 = vpack.c.bf16 %v73_v31, %v70_v29  ;;  %v72_v39 = vld [vmem:[%s4289_s1 + $0xa8] sm:$0xff] }
  0x1b   :  { %v3472_v35 = vpack.c.bf16 %v374_v33, %v371_v32  ;;  %v370_v37 = vld [vmem:[%s4291_s3 + $0x60] sm:$0xff]  ;;  %2624 = vmatprep.subr.bf16.mxu1 %v2623_v22  ;;  %v373_v40 = vld [vmem:[%s4291_s3 + $0x78] sm:$0xff]  ;;  %v76_v41 = vld [vmem:[%s4289_s1 + $0xc8] sm:$0xff]  ;;  %v2629_v49 = vpack.c.bf16 %v72_v39, %v69_v36 }
  0x1c   :  { %v3490_v42 = vpack.c.bf16 %v373_v40, %v370_v37  ;;  %v79_v43 = vld [vmem:[%s4289_s1 + $0xe0] sm:$0xff]  ;;  %v377_v44 = vld [vmem:[%s4291_s3 + $0x98] sm:$0xff]  ;;  %v380_v45 = vld [vmem:[%s4291_s3 + $0xb0] sm:$0xff] }
  0x1d   :  { %2686 = vmatpush1.bf16.msra.mxu0 %v3460_v30  ;;  %v3502_v46 = vpack.c.bf16 %v380_v45, %v377_v44  ;;  %v376_v47 = vld [vmem:[%s4291_s3 + $0x90] sm:$0xff]  ;;  %v379_v48 = vld [vmem:[%s4291_s3 + $0xa8] sm:$0xff]  ;;  %v2631_v51 = vpack.c.bf16 %v79_v43, %v76_v41  ;;  %v75_v52 = vld [vmem:[%s4289_s1 + $0xc0] sm:$0xff] }
  0x1e   :  { %2688 = vmatprep.subr.bf16.mxu0 %v3472_v35  ;;  %2626 = vmatpush1.bf16.msra.mxu1 %v2625_v34  ;;  %v383_v50 = vld [vmem:[%s4291_s3 + $0xc8] sm:$0xff]  ;;  %v78_v53 = vld [vmem:[%s4289_s1 + $0xd8] sm:$0xff]  ;;  %v386_v54 = vld [vmem:[%s4291_s3 + $0xe0] sm:$0xff]  ;;  %v3523_v55 = vpack.c.bf16 %v379_v48, %v376_v47 }
  0x1f   :  { %2628 = vmatprep.subr.bf16.mxu1 %v2627_v38  ;;  %v82_v56 = vld [vmem:[%s4289_s1 + $0xf8] sm:$0xff]  ;;  %v85_v57 = vld [vmem:[%s4289_s1 + $0x110] sm:$0xff]  ;;  %v3532_v58 = vpack.c.bf16 %v386_v54, %v383_v50  ;;  %v382_v59 = vld [vmem:[%s4291_s3 + $0xc0] sm:$0xff]  ;;  %v2633_v61 = vpack.c.bf16 %v78_v53, %v75_v52 }
  0x20   :  { %v385_v60 = vld [vmem:[%s4291_s3 + $0xd8] sm:$0xff]  ;;  %v392_v63 = vld [vmem:[%s4291_s3 + $0x110] sm:$0xff]  ;;  %v2635_v1 = vpack.c.bf16 %v85_v57, %v82_v56  ;;  %v84_v3 = vld [vmem:[%s4289_s1 + $0x108] sm:$0xff] }
  0x21   :  { %2690 = vmatpush1.bf16.msra.mxu0 %v3490_v42  ;;  %v389_v62 = vld [vmem:[%s4291_s3 + $0xf8] sm:$0xff]  ;;  %v81_v2 = vld [vmem:[%s4289_s1 + $0xf0] sm:$0xff]  ;;  %v3553_v4 = vpack.c.bf16 %v385_v60, %v382_v59  ;;  %v88_v5 = vld [vmem:[%s4289_s1 + $0x128] sm:$0xff] }
  0x22   :  { %2692 = vmatprep.subr.bf16.mxu0 %v3502_v46  ;;  %2630 = vmatpush1.bf16.msra.mxu1 %v2629_v49  ;;  %v91_v6 = vld [vmem:[%s4289_s1 + $0x140] sm:$0xff]  ;;  %v3562_v7 = vpack.c.bf16 %v392_v63, %v389_v62  ;;  %v388_v8 = vld [vmem:[%s4291_s3 + $0xf0] sm:$0xff]  ;;  %v391_v9 = vld [vmem:[%s4291_s3 + $0x108] sm:$0xff]  ;;  %v2637_v10 = vpack.c.bf16 %v84_v3, %v81_v2 }
  0x23   :  { %2632 = vmatprep.subr.bf16.mxu1 %v2631_v51  ;;  %v395_v11 = vld [vmem:[%s4291_s3 + $0x128] sm:$0xff]  ;;  %v398_v12 = vld [vmem:[%s4291_s3 + $0x140] sm:$0xff]  ;;  %v2639_v14 = vpack.c.bf16 %v91_v6, %v88_v5  ;;  %v90_v16 = vld [vmem:[%s4289_s1 + $0x138] sm:$0xff]  ;;  %v3583_v17 = vpack.c.bf16 %v391_v9, %v388_v8 }
  0x24   :  { %v87_v15 = vld [vmem:[%s4289_s1 + $0x120] sm:$0xff]  ;;  %v94_v19 = vld [vmem:[%s4289_s1 + $0x158] sm:$0xff]  ;;  %v97_v20 = vld [vmem:[%s4289_s1 + $0x170] sm:$0xff]  ;;  %v3592_v21 = vpack.c.bf16 %v398_v12, %v395_v11 }
  0x25   :  { %2694 = vmatpush1.bf16.msra.mxu0 %v3523_v55  ;;  %v394_v22 = vld [vmem:[%s4291_s3 + $0x120] sm:$0xff]  ;;  %v397_v23 = vld [vmem:[%s4291_s3 + $0x138] sm:$0xff]  ;;  %v2641_v24 = vpack.c.bf16 %v90_v16, %v87_v15  ;;  %v404_v27 = vld [vmem:[%s4291_s3 + $0x170] sm:$0xff]  ;;  %v2643_v28 = vpack.c.bf16 %v97_v20, %v94_v19  ;;  %v4300_v20 = vmov 0.0|0.0  }
  0x26   :  { %2696 = vmatprep.subr.bf16.mxu0 %v3532_v58  ;;  %2634 = vmatpush1.bf16.msra.mxu1 %v2633_v61  ;;  %v401_v25 = vld [vmem:[%s4291_s3 + $0x158] sm:$0xff]  ;;  %v93_v29 = vld [vmem:[%s4289_s1 + $0x150] sm:$0xff]  ;;  %v96_v31 = vld [vmem:[%s4289_s1 + $0x168] sm:$0xff]  ;;  %v3613_v32 = vpack.c.bf16 %v397_v23, %v394_v22 }
  0x27   :  { %2636 = vmatprep.subr.bf16.mxu1 %v2635_v1  ;;  %v53_v33 = vld [vmem:[%s4289_s1 + $0x10] sm:$0xff]  ;;  %v56_v34 = vld [vmem:[%s4289_s1 + $0x28] sm:$0xff]  ;;  %v3622_v36 = vpack.c.bf16 %v404_v27, %v401_v25  ;;  %v2645_v39 = vpack.c.bf16 %v96_v31, %v93_v29  ;;  %v59_v43 = vld [vmem:[%s4289_s1 + $0x40] sm:$0xff] }
  0x28   :  { %v400_v37 = vld [vmem:[%s4291_s3 + $0x150] sm:$0xff]  ;;  %v403_v38 = vld [vmem:[%s4291_s3 + $0x168] sm:$0xff]  ;;  %v2647_v40 = vpack.c.bf16 %v56_v34, %v53_v33  ;;  %v62_v44 = vld [vmem:[%s4289_s1 + $0x58] sm:$0xff] }
  0x29   :  { %2698 = vmatpush1.bf16.msra.mxu0 %v3553_v4  ;;  %v3631_v41 = vpack.c.bf16 %v403_v38, %v400_v37  ;;  %v3643_v45 = vld [vmem:[%s4288_s0] sm:$0xff]  ;;  %v2651_v47 = vpack.c.bf16 %v62_v44, %v59_v43  ;;  %v65_v48 = vld [vmem:[%s4289_s1 + $0x70] sm:$0xff]  ;;  %v68_v49 = vld [vmem:[%s4289_s1 + $0x88] sm:$0xff] }
  0x2a   :  { %2700 = vmatprep.subr.bf16.mxu0 %v3562_v7  ;;  %2638 = vmatpush1.bf16.msra.mxu1 %v2637_v10  ;;  %v3658_v50 = vld [vmem:[%s4288_s0 + $0x8] sm:$0xff]  ;;  %v2655_v51 = vpack.c.bf16 %v68_v49, %v65_v48  ;;  %v71_v52 = vld [vmem:[%s4289_s1 + $0xa0] sm:$0xff]  ;;  %v74_v53 = vld [vmem:[%s4289_s1 + $0xb8] sm:$0xff] }
  0x2b   :  { %2640 = vmatprep.subr.bf16.mxu1 %v2639_v14  ;;  %v3675_v54 = vld [vmem:[%s4288_s0 + $0x10] sm:$0xff]  ;;  %v2659_v56 = vpack.c.bf16 %v74_v53, %v71_v52  ;;  %v80_v59 = vld [vmem:[%s4289_s1 + $0xe8] sm:$0xff]  ;;  %v46_v60 = vld [vmem:[%s4288_s0 + $0x18] sm:$0xff] }
  0x2c   :  { %v77_v57 = vld [vmem:[%s4289_s1 + $0xd0] sm:$0xff]  ;;  %v83_v62 = vld [vmem:[%s4289_s1 + $0x100] sm:$0xff]  ;;  %v86_v63 = vld [vmem:[%s4289_s1 + $0x118] sm:$0xff] }
  0x2d   :  { %2702 = vmatpush1.bf16.msra.mxu0 %v3583_v17  ;;  %v2663_v61 = vpack.c.bf16 %v80_v59, %v77_v57  ;;  %v47_v1 = vld [vmem:[%s4288_s0 + $0x20] sm:$0xff]  ;;  %v2667_v2 = vpack.c.bf16 %v86_v63, %v83_v62  ;;  %v89_v3 = vld [vmem:[%s4289_s1 + $0x130] sm:$0xff]  ;;  %v92_v5 = vld [vmem:[%s4289_s1 + $0x148] sm:$0xff] }
  0x2e   :  { %2704 = vmatprep.subr.bf16.mxu0 %v3592_v21  ;;  %2642 = vmatpush1.bf16.msra.mxu1 %v2641_v24  ;;  %v48_v6 = vld [vmem:[%s4288_s0 + $0x28] sm:$0xff]  ;;  %v2671_v8 = vpack.c.bf16 %v92_v5, %v89_v3  ;;  %v95_v9 = vld [vmem:[%s4289_s1 + $0x160] sm:$0xff]  ;;  %v98_v10 = vld [vmem:[%s4289_s1 + $0x178] sm:$0xff] }
  0x2f   :  { %2644 = vmatprep.subr.bf16.mxu1 %v2643_v28  ;;  %v49_v11 = vld [vmem:[%s4288_s0 + $0x30] sm:$0xff]  ;;  %v2675_v12 = vpack.c.bf16 %v98_v10, %v95_v9  ;;  %v50_v14 = vld [vmem:[%s4288_s0 + $0x38] sm:$0xff]  ;;  %v363_v16 = vld [vmem:[%s4291_s3 + $0x28] sm:$0xff] }
  0x30   :  { %v360_v15 = vld [vmem:[%s4291_s3 + $0x10] sm:$0xff]  ;;  %v366_v22 = vld [vmem:[%s4291_s3 + $0x40] sm:$0xff]  ;;  %v369_v23 = vld [vmem:[%s4291_s3 + $0x58] sm:$0xff] }
  0x31   :  { %2706 = vmatpush1.bf16.msra.mxu0 %v3613_v32  ;;  %v3741_v19 = vpack.c.bf16 %v363_v16, %v360_v15  ;;  %v3754_v24 = vpack.c.bf16 %v369_v23, %v366_v22  ;;  %v372_v25 = vld [vmem:[%s4291_s3 + $0x70] sm:$0xff]  ;;  %v375_v27 = vld [vmem:[%s4291_s3 + $0x88] sm:$0xff]  ;;  %v378_v29 = vld [vmem:[%s4291_s3 + $0xa0] sm:$0xff] }
  0x32   :  { %2708 = vmatprep.subr.bf16.mxu0 %v3622_v36  ;;  %2646 = vmatpush1.bf16.msra.mxu1 %v2645_v39  ;;  %v3765_v28 = vpack.c.bf16 %v375_v27, %v372_v25  ;;  %v381_v31 = vld [vmem:[%s4291_s3 + $0xb8] sm:$0xff]  ;;  %v384_v34 = vld [vmem:[%s4291_s3 + $0xd0] sm:$0xff]  ;;  %v387_v37 = vld [vmem:[%s4291_s3 + $0xe8] sm:$0xff] }
  0x33   :  { %2648 = vmatprep.subr.bf16.mxu1 %v2647_v40  ;;  %v3775_v33 = vpack.c.bf16 %v381_v31, %v378_v29  ;;  %v3785_v38 = vpack.c.bf16 %v387_v37, %v384_v34  ;;  %v390_v39 = vld [vmem:[%s4291_s3 + $0x100] sm:$0xff]  ;;  %v396_v44 = vld [vmem:[%s4291_s3 + $0x130] sm:$0xff]  ;;  %v405_v49 = vld [vmem:[%s4291_s3 + $0x178] sm:$0xff] }
  0x34   :  { %v402_v48 = vld [vmem:[%s4291_s3 + $0x160] sm:$0xff] }
  0x35   :  { %2710 = vmatpush1.bf16.msra.mxu0 %v3631_v41  ;;  %181 = vmatmul.mubr.f32.vlgmr.msra.gmra.mrb[0].mxu1 %v3643_v45  ;;  %v3851_v57 = vld [vmem:[%s4292_s4] sm:$0x7] }
  0x36   :  { %2736 = vmatprep.subr.bf16.mxu0 %v3416_v13  ;;  %2650 = vmatpush3.bf16.msra.mxu1 %v2647_v40  ;;  %v393_v40 = vld [vmem:[%s4291_s3 + $0x118] sm:$0xff] }
  0x37   :  { %186 = vmatprep.mubr.f32.mxu1 %v4298_v0  ;;  %2652 = vmatprep.subr.bf16.mxu1 %v2651_v47  ;;  %v3797_v43 = vpack.c.bf16 %v393_v40, %v390_v39 }
  0x38   :  { %491 = vmatmul.mubr.f32.vlgmr.msra.gmra.mrb[0].mxu0 %v4298_v0 }
  0x39   :  { %2738 = vmatpush1.bf16.msra.mxu0 %v3427_v18  ;;  %656 = vmatprep.mubr.f32.mxu0 %v4298_v0 }
  0x3a   :  { %187 = vmatmul.mubr.f32.gmra.mrb[2].mxu1 %v3658_v50  ;;  %2740 = vmatprep.subr.bf16.mxu0 %v3449_v26 }
  0x3b   :  { %2654 = vmatpush3.bf16.msra.mxu1 %v2651_v47  ;;  %192 = vmatprep.mubr.f32.mxu1 %v4298_v0 }
  0x3c   :  { %2656 = vmatprep.subr.bf16.mxu1 %v2655_v51 }
  0x3d   :  { %2742 = vmatpush1.bf16.msra.mxu0 %v3460_v30 }
  0x3e   :  { %193 = vmatmul.mubr.f32.gmra.mrb[4].mxu1 %v3675_v54  ;;  %2744 = vmatprep.subr.bf16.mxu0 %v3472_v35 }
  0x3f   :  { %2658 = vmatpush3.bf16.msra.mxu1 %v2655_v51  ;;  %198 = vmatprep.mubr.f32.mxu1 %v4298_v0  ;;  %v101_v51 = vlaneseq }
  0x40   :  { %2660 = vmatprep.subr.bf16.mxu1 %v2659_v56 }
  0x41   :  { %2746 = vmatpush1.bf16.msra.mxu0 %v3490_v42  ;;  %v3841_v52 = vshrl.u32 %v101_v51, 7 }
  0x42   :  { %199 = vmatmul.mubr.f32.gmra.mrb[6].mxu1 %v46_v60  ;;  %2748 = vmatprep.subr.bf16.mxu0 %v3502_v46 }
  0x43   :  { %2662 = vmatpush3.bf16.msra.mxu1 %v2659_v56  ;;  %204 = vmatprep.mubr.f32.mxu1 %v4298_v0  ;;  %v103_v53 = vsub.s32 0, %v3841_v52  ;;  %v107_v56 = vsub.s32 1, %v3841_v52 }
  0x44   :  { %2664 = vmatprep.subr.bf16.mxu1 %v2663_v61 }
  0x45   :  { %2750 = vmatpush1.bf16.msra.mxu0 %v3523_v55  ;;  %v418_v63 = vrot.slane %v3851_v57, %v107_v56 }
  0x46   :  { %205 = vmatmul.mubr.f32.gmra.mrb[8].mxu1 %v47_v1  ;;  %2752 = vmatprep.subr.bf16.mxu0 %v3532_v58 }
  0x47   :  { %2666 = vmatpush3.bf16.msra.mxu1 %v2663_v61  ;;  %210 = vmatprep.mubr.f32.mxu1 %v4298_v0  ;;  %v414_v61 = vrot.slane %v3851_v57, %v103_v53 }
  0x48   :  { %2668 = vmatprep.subr.bf16.mxu1 %v2667_v2 }
  0x49   :  { %2754 = vmatpush1.bf16.msra.mxu0 %v3553_v4 }
  0x4a   :  { %211 = vmatmul.mubr.f32.gmra.mrb[10].mxu1 %v48_v6  ;;  %2756 = vmatprep.subr.bf16.mxu0 %v3562_v7 }
  0x4b   :  { %2670 = vmatpush3.bf16.msra.mxu1 %v2667_v2  ;;  %216 = vmatprep.mubr.f32.mxu1 %v4298_v0 }
  0x4c   :  { %2672 = vmatprep.subr.bf16.mxu1 %v2671_v8 }
  0x4d   :  { %2758 = vmatpush1.bf16.msra.mxu0 %v3583_v17 }
  0x4e   :  { %217 = vmatmul.mubr.f32.gmra.mrb[12].mxu1 %v49_v11  ;;  %2760 = vmatprep.subr.bf16.mxu0 %v3592_v21 }
  0x4f   :  { %2674 = vmatpush3.bf16.msra.mxu1 %v2671_v8  ;;  %222 = vmatprep.mubr.f32.mxu1 %v4298_v0 }
  0x50   :  { %2676 = vmatprep.subr.bf16.mxu1 %v2675_v12 }
  0x51   :  { %2762 = vmatpush1.bf16.msra.mxu0 %v3613_v32 }
  0x52   :  { %223 = vmatmul.mubr.f32.gmra.mrb[14].mxu1 %v50_v14  ;;  %2764 = vmatprep.subr.bf16.mxu0 %v3622_v36 }
  0x53   :  { %2678 = vmatpush3.bf16.msra.mxu1 %v2675_v12  ;;  %2279 = vmatprep.mubr.f32.mxu1 %v3643_v45  ;;  %v399_v45 = vld [vmem:[%s4291_s3 + $0x148] sm:$0xff] }
  0x54   :  { %2711 = vmatprep.subr.bf16.mxu1 %v4300_v20  ;;  %v3807_v47 = vpack.c.bf16 %v399_v45, %v396_v44 }
  0x55   :  { %2766 = vmatpush1.bf16.msra.mxu0 %v3631_v41 }
  0x56   :  { %2280 = vmatmul.mubr.f32.vlgmr.msra.gmra.mrb[16].mxu1 %v3658_v50  ;;  %2792 = vmatprep.subr.bf16.mxu0 %v3416_v13  ;;  %v3817_v50 = vpack.c.bf16 %v405_v49, %v402_v48 }
  0x57   :  { %2713 = vmatpush3.bf16.msra.mxu1 %v3741_v19  ;;  %2282 = vmatprep.mubr.f32.mxu1 %v3675_v54  ;;  %v99_v54 = vld [vmem:[%s4290_s2] sm:$0x7] }
  0x58   :  { %2714 = vmatprep.subr.bf16.mxu1 %v4300_v20  ;;  %v104_v59 = vrot.slane %v99_v54, %v103_v53 }
  0x5a   :  { %2283 = vmatmul.mubr.f32.gmra.mrb[18].mxu1 %v46_v60  ;;  %v108_v60 = vrot.slane %v99_v54, %v107_v56 }
  0x5b   :  { %2716 = vmatpush3.bf16.msra.mxu1 %v3754_v24  ;;  %2285 = vmatprep.mubr.f32.mxu1 %v47_v1 }
  0x5c   :  { %2717 = vmatprep.subr.bf16.mxu1 %v4300_v20 }
  0x5e   :  { %2286 = vmatmul.mubr.f32.gmra.mrb[20].mxu1 %v48_v6 }
  0x5f   :  { %2719 = vmatpush3.bf16.msra.mxu1 %v3765_v28  ;;  %2288 = vmatprep.mubr.f32.mxu1 %v49_v11 }
  0x60   :  { %2720 = vmatprep.subr.bf16.mxu1 %v4300_v20 }
  0x62   :  { %2289 = vmatmul.mubr.f32.gmra.mrb[22].mxu1 %v50_v14 }
  0x63   :  { %2722 = vmatpush3.bf16.msra.mxu1 %v3775_v33  ;;  %2323 = vmatprep.mubr.msk.f32.mxu1 %vm3323_vm0, %v4298_v0 }
  0x64   :  { %2723 = vmatprep.subr.bf16.mxu1 %v4300_v20 }
  0x67   :  { %2725 = vmatpush3.bf16.msra.mxu1 %v3785_v38 }
  0x68   :  { %2726 = vmatprep.subr.bf16.mxu1 %v4300_v20 }
  0x6b   :  { %2728 = vmatpush3.bf16.msra.mxu1 %v3797_v43 }
  0x6c   :  { %2729 = vmatprep.subr.bf16.mxu1 %v4300_v20 }
  0x6f   :  { %2731 = vmatpush3.bf16.msra.mxu1 %v3807_v47 }
  0x70   :  { %2732 = vmatprep.subr.bf16.mxu1 %v4300_v20 }
  0x73   :  { %2734 = vmatpush3.bf16.msra.mxu1 %v3817_v50 }
  0x74   :  { %2767 = vmatprep.subr.bf16.mxu1 %v4300_v20 }
  0x76   :  { %2324 = vmatmul.mubr.f32.vlgmr.msra.gmra.mrb[24].mxu1 %v4298_v0 }
  0x77   :  { %2769 = vmatpush3.bf16.msra.mxu1 %v3741_v19  ;;  %2358 = vmatprep.mubr.msk.f32.mxu1 %vm3323_vm0, %v4298_v0 }
  0x78   :  { %2770 = vmatprep.subr.bf16.mxu1 %v4300_v20 }
  0x7b   :  { %2772 = vmatpush3.bf16.msra.mxu1 %v3754_v24 }
  0x7c   :  { %2773 = vmatprep.subr.bf16.mxu1 %v4300_v20 }
  0x7f   :  { %2775 = vmatpush3.bf16.msra.mxu1 %v3765_v28 }
  0x80   :  { %2776 = vmatprep.subr.bf16.mxu1 %v4300_v20 }
  0x83   :  { %2778 = vmatpush3.bf16.msra.mxu1 %v3775_v33 }
  0x84   :  { %2779 = vmatprep.subr.bf16.mxu1 %v4300_v20 }
  0x87   :  { %2781 = vmatpush3.bf16.msra.mxu1 %v3785_v38 }
  0x88   :  { %2782 = vmatprep.subr.bf16.mxu1 %v4300_v20 }
  0x8b   :  { %2784 = vmatpush3.bf16.msra.mxu1 %v3797_v43 }
  0x8c   :  { %2785 = vmatprep.subr.bf16.mxu1 %v4300_v20 }
  0x8f   :  { %2787 = vmatpush3.bf16.msra.mxu1 %v3807_v47 }
  0x90   :  { %2788 = vmatprep.subr.bf16.mxu1 %v4300_v20 }
  0x93   :  { %2790 = vmatpush3.bf16.msra.mxu1 %v3817_v50 }
  0x94   :  { %2823 = vmatprep.subr.bf16.mxu1 %v4300_v20 }
 0x108   :  { %v182_v62 = vpop.f32.mrb[0].mxu1 }
 0x109   :  { %v183_v1 = vadd.f32 %v182_v62, %v104_v59  ;;  %v184_v2 = vpop.f32.mrb[1].mxu1 }
 0x10a   :  { %v185_v3 = vadd.f32 %v184_v2, %v108_v60 }
 0x10b   :  { %v492_v5 = vpop.f32.mrb[0].mxu0  ;;  %v3160_v6 = vadd.f32 %v414_v61, %v183_v1 }
 0x10c   :  { %v494_v8 = vpop.f32.mrb[1].mxu0  ;;  %v3163_v10 = vadd.f32 %v418_v63, %v185_v3 }
 0x10d   :  { %v188_v9 = vpop.f32.mrb[2].mxu1  ;;  %v3161_v12 = vadd.f32 %v3160_v6, %v492_v5 }
 0x10e   :  { %v189_v11 = vadd.f32 %v188_v9, %v104_v59  ;;  %v190_v14 = vpop.f32.mrb[3].mxu1  ;;  %v3164_v16 = vadd.f32 %v3163_v10, %v494_v8 }
 0x10f   :  { %v191_v15 = vadd.f32 %v190_v14, %v108_v60 }
 0x110   :  { %v3855_v22 = vadd.f32 %v414_v61, %v189_v11 }
 0x111   :  { %v194_v23 = vpop.f32.mrb[4].mxu1  ;;  %v3857_v25 = vadd.f32 %v418_v63, %v191_v15 }
 0x112   :  { %v195_v27 = vadd.f32 %v194_v23, %v104_v59  ;;  %v196_v29 = vpop.f32.mrb[5].mxu1  ;;  %v111_v23 = vsub.s32 2, %v3841_v52 }
 0x113   :  { %v197_v31 = vadd.f32 %v196_v29, %v108_v60 }
 0x114   :  { %v3859_v34 = vadd.f32 %v414_v61, %v195_v27 }
 0x115   :  { %v200_v37 = vpop.f32.mrb[6].mxu1  ;;  %v3861_v39 = vadd.f32 %v418_v63, %v197_v31 }
 0x116   :  { %v201_v40 = vadd.f32 %v200_v37, %v104_v59  ;;  %v202_v44 = vpop.f32.mrb[7].mxu1 }
 0x117   :  { %v203_v45 = vadd.f32 %v202_v44, %v108_v60 }
 0x118   :  { %v3863_v48 = vadd.f32 %v414_v61, %v201_v40 }
 0x119   :  { %v206_v49 = vpop.f32.mrb[8].mxu1  ;;  %v3865_v51 = vadd.f32 %v418_v63, %v203_v45  ;;  %v112_v45 = vrot.slane %v99_v54, %v111_v23 }
 0x11a   :  { %v207_v53 = vadd.f32 %v206_v49, %v104_v59  ;;  %v208_v56 = vpop.f32.mrb[9].mxu1 }
 0x11b   :  { %v209_v62 = vadd.f32 %v208_v56, %v108_v60 }
 0x11c   :  { %v3867_v1 = vadd.f32 %v414_v61, %v207_v53 }
 0x11d   :  { %v212_v2 = vpop.f32.mrb[10].mxu1  ;;  %v3869_v3 = vadd.f32 %v418_v63, %v209_v62 }
 0x11e   :  { %v213_v5 = vadd.f32 %v212_v2, %v104_v59  ;;  %v214_v6 = vpop.f32.mrb[11].mxu1 }
 0x11f   :  { %v215_v8 = vadd.f32 %v214_v6, %v108_v60  ;;  %v2006_v6 = vmul.f32 -1.442695, %v3161_v12 }
 0x120   :  { %v3871_v9 = vadd.f32 %v414_v61, %v213_v5 }
 0x121   :  { %v218_v10 = vpop.f32.mrb[12].mxu1  ;;  %v3873_v11 = vadd.f32 %v418_v63, %v215_v8  ;;  %3214 = vpow2.f32 %v2006_v6 }
 0x122   :  { %v219_v14 = vadd.f32 %v218_v10, %v104_v59  ;;  %v220_v15 = vpop.f32.mrb[13].mxu1 }
 0x123   :  { %v221_v27 = vadd.f32 %v220_v15, %v108_v60 }
 0x124   :  { %v3876_v29 = vadd.f32 %v414_v61, %v219_v14 }
 0x125   :  { %v224_v31 = vpop.f32.mrb[14].mxu1  ;;  %v3878_v37 = vadd.f32 %v418_v63, %v221_v27 }
 0x126   :  { %v225_v40 = vadd.f32 %v224_v31, %v104_v59  ;;  %v226_v44 = vpop.f32.mrb[15].mxu1  ;;  %v2007_v31 = vmul.f32 -1.442695, %v3164_v16 }
 0x127   :  { %v227_v49 = vadd.f32 %v226_v44, %v108_v60 }
 0x128   :  { %v3880_v53 = vadd.f32 %v414_v61, %v225_v40  ;;  %3216 = vpow2.f32 %v2007_v31 }
 0x129   :  { %v2281_v56 = vpop.f32.mrb[16].mxu1  ;;  %v3882_v62 = vadd.f32 %v418_v63, %v227_v49 }
 0x12a   :  { %v3884_v2 = vadd.f32 %v2281_v56, %v112_v45  ;;  %v295_v5 = vpop.f32.mrb[17].mxu1  ;;  %v3899_v56 = vrot.slane %v3851_v57, %v111_v23 }
 0x12b   :  { %v3215_v12 = vpop.eup %3214 }
 0x12c   :  { %v571_v44 = vadd.f32 1.0, %v3215_v12 }
 0x12d   :  { %v2284_v52 = vpop.f32.mrb[18].mxu1 }
 0x12e   :  { %v3886_v8 = vadd.f32 %v2284_v52, %v112_v45  ;;  %v305_v10 = vpop.f32.mrb[19].mxu1  ;;  %3218 = vrcp.f32 %v571_v44 }
 0x12f   :  { %v3888_v14 = vadd.f32 %v305_v10, %v112_v45 }
 0x131   :  { %v2287_v59 = vpop.f32.mrb[20].mxu1 }
 0x132   :  { %v3890_v15 = vadd.f32 %v2287_v59, %v112_v45  ;;  %v315_v54 = vpop.f32.mrb[21].mxu1  ;;  %v3217_v49 = vpop.eup %3216 }
 0x133   :  { %v3892_v60 = vadd.f32 %v315_v54, %v112_v45  ;;  %v578_v6 = vadd.f32 1.0, %v3217_v49 }
 0x135   :  { %v2290_v61 = vpop.f32.mrb[22].mxu1  ;;  %3220 = vrcp.f32 %v578_v6 }
 0x136   :  { %v3894_v63 = vadd.f32 %v2290_v61, %v112_v45  ;;  %v325_v27 = vpop.f32.mrb[23].mxu1  ;;  %v296_v61 = vadd.f32 %v295_v5, %v112_v45 }
 0x137   :  { %v3896_v40 = vadd.f32 %v325_v27, %v112_v45 }
 0x138   :  { %4302 = vst [vmem:[#allocation6_spill] sm:$0xff] %v3894_v63  ;;  %v3219_v54 = vpop.eup %3218 }
 0x13f   :  { %v3221_v27 = vpop.eup %3220 }
 0x140   :  { %v584_v20 = vsub.f32 1.0, %v3221_v27  ;;  %v586_v44 = vmul.f32 0.0, %v3221_v27 }
 0x149   :  { %v563_v52 = vpop.f32.mrb[24].mxu1 }
 0x14a   :  { %v564_v10 = vadd.f32 %v563_v52, %v3899_v56  ;;  %v2325_v59 = vpop.f32.mrb[25].mxu1 }
 0x14c   :  { %v581_v0 = vmul.f32 %v3219_v54, %v564_v10 }
 0x14e   :  { %v582_v16 = vadd.f32 %v581_v0, %v296_v61  ;;  %v4303_v0 = vmov 0.0|0.0  }
 0x150   :  { %3222 = vtanh.f32 %v582_v16 }
 0x15a   :  { %v3223_v31 = vpop.eup %3222 }
 0x15b   :  { %v585_v12 = vmul.f32 %v3223_v31, %v584_v20  ;;  %v4304_v20 = vmov 0.0  }
 0x15d   :  { %v3902_v63 = vadd.f32 %v586_v44, %v585_v12 }
 0x15f   :  { %588 = vst [vmem:[%s4297_s9] sm:$0xff] %v3902_v63  ;;  %657 = vmatmul.mubr.f32.vlgmr.msra.gmra.mrb[2].mxu0 %v3902_v63  ;;  %2359 = vmatmul.mubr.f32.vlgmr.msra.gmra.mrb[26].mxu1 %v3902_v63 }
 0x160   :  { %2794 = vmatpush1.bf16.msra.mxu0 %v3427_v18  ;;  %2825 = vmatpush3.bf16.msra.mxu1 %v3741_v19 }
 0x161   :  { %2796 = vmatprep.subr.bf16.mxu0 %v3449_v26  ;;  %2826 = vmatprep.subr.bf16.mxu1 %v4303_v0 }
 0x162   :  { %822 = vmatprep.mubr.f32.mxu0 %v4304_v20  ;;  %2393 = vmatprep.mubr.msk.f32.mxu1 %vm3323_vm0, %v4304_v20 }
 0x164   :  { %2798 = vmatpush1.bf16.msra.mxu0 %v3460_v30  ;;  %2828 = vmatpush3.bf16.msra.mxu1 %v3754_v24 }
 0x165   :  { %2800 = vmatprep.subr.bf16.mxu0 %v3472_v35  ;;  %2829 = vmatprep.subr.bf16.mxu1 %v4303_v0 }
 0x168   :  { %2802 = vmatpush1.bf16.msra.mxu0 %v3490_v42  ;;  %2831 = vmatpush3.bf16.msra.mxu1 %v3765_v28 }
 0x169   :  { %2804 = vmatprep.subr.bf16.mxu0 %v3502_v46  ;;  %2832 = vmatprep.subr.bf16.mxu1 %v4303_v0 }
 0x16c   :  { %2806 = vmatpush1.bf16.msra.mxu0 %v3523_v55  ;;  %2834 = vmatpush3.bf16.msra.mxu1 %v3775_v33 }
 0x16d   :  { %2808 = vmatprep.subr.bf16.mxu0 %v3532_v58  ;;  %2835 = vmatprep.subr.bf16.mxu1 %v4303_v0 }
 0x170   :  { %2810 = vmatpush1.bf16.msra.mxu0 %v3553_v4  ;;  %2837 = vmatpush3.bf16.msra.mxu1 %v3785_v38 }
 0x171   :  { %2812 = vmatprep.subr.bf16.mxu0 %v3562_v7  ;;  %2838 = vmatprep.subr.bf16.mxu1 %v4303_v0 }
 0x174   :  { %2814 = vmatpush1.bf16.msra.mxu0 %v3583_v17  ;;  %2840 = vmatpush3.bf16.msra.mxu1 %v3797_v43 }
 0x175   :  { %2816 = vmatprep.subr.bf16.mxu0 %v3592_v21  ;;  %2841 = vmatprep.subr.bf16.mxu1 %v4303_v0 }
 0x178   :  { %2818 = vmatpush1.bf16.msra.mxu0 %v3613_v32  ;;  %2843 = vmatpush3.bf16.msra.mxu1 %v3807_v47 }
 0x179   :  { %2820 = vmatprep.subr.bf16.mxu0 %v3622_v36  ;;  %2844 = vmatprep.subr.bf16.mxu1 %v4303_v0 }
 0x17c   :  { %2822 = vmatpush1.bf16.msra.mxu0 %v3631_v41  ;;  %2846 = vmatpush3.bf16.msra.mxu1 %v3817_v50 }
 0x17d   :  { %2848 = vmatprep.subr.bf16.mxu0 %v3416_v13  ;;  %2879 = vmatprep.subr.bf16.mxu1 %v4303_v0 }
 0x232   :  { %v658_v57 = vpop.f32.mrb[2].mxu0  ;;  %v729_v23 = vpop.f32.mrb[26].mxu1 }
 0x233   :  { %v3167_v45 = vadd.f32 %v3855_v22, %v658_v57  ;;  %v660_v5 = vpop.f32.mrb[3].mxu0  ;;  %v2360_v49 = vpop.f32.mrb[27].mxu1  ;;  %v730_v27 = vadd.f32 %v729_v23, %v3899_v56 }
 0x234   :  { %v3170_v6 = vadd.f32 %v3857_v25, %v660_v5 }
 0x235   :  { %v2008_v52 = vmul.f32 -1.442695, %v3167_v45 }
 0x236   :  { %v2009_v10 = vmul.f32 -1.442695, %v3170_v6 }
 0x237   :  { %3224 = vpow2.f32 %v2008_v52 }
 0x238   :  { %3226 = vpow2.f32 %v2009_v10 }
 0x241   :  { %v3225_v59 = vpop.eup %3224 }
 0x242   :  { %v737_v54 = vadd.f32 1.0, %v3225_v59  ;;  %v3227_v61 = vpop.eup %3226 }
 0x243   :  { %v744_v16 = vadd.f32 1.0, %v3227_v61 }
 0x244   :  { %3228 = vrcp.f32 %v737_v54 }
 0x245   :  { %3230 = vrcp.f32 %v744_v16 }
 0x24e   :  { %v3229_v31 = vpop.eup %3228 }
 0x24f   :  { %v747_v12 = vmul.f32 %v3229_v31, %v730_v27  ;;  %v3231_v44 = vpop.eup %3230 }
 0x250   :  { %v750_v57 = vsub.f32 1.0, %v3231_v44  ;;  %v752_v5 = vmul.f32 %v3231_v44, %v3902_v63 }
 0x251   :  { %v748_v22 = vadd.f32 %v747_v12, %v3884_v2 }
 0x253   :  { %3232 = vtanh.f32 %v748_v22 }
 0x25d   :  { %v3233_v25 = vpop.eup %3232 }
 0x25e   :  { %v751_v45 = vmul.f32 %v3233_v25, %v750_v57 }
 0x260   :  { %v3950_v49 = vadd.f32 %v752_v5, %v751_v45 }
 0x262   :  { %754 = vst [vmem:[%s4297_s9 + $0x8] sm:$0xff] %v3950_v49  ;;  %823 = vmatmul.mubr.f32.vlgmr.msra.gmra.mrb[4].mxu0 %v3950_v49  ;;  %2394 = vmatmul.mubr.f32.vlgmr.msra.gmra.mrb[28].mxu1 %v3950_v49 }
 0x263   :  { %2850 = vmatpush1.bf16.msra.mxu0 %v3427_v18  ;;  %2881 = vmatpush3.bf16.msra.mxu1 %v3741_v19 }
 0x264   :  { %2852 = vmatprep.subr.bf16.mxu0 %v3449_v26  ;;  %2882 = vmatprep.subr.bf16.mxu1 %v4303_v0 }
 0x265   :  { %988 = vmatprep.mubr.f32.mxu0 %v4304_v20  ;;  %2428 = vmatprep.mubr.msk.f32.mxu1 %vm3323_vm0, %v4304_v20 }
 0x267   :  { %2854 = vmatpush1.bf16.msra.mxu0 %v3460_v30  ;;  %2884 = vmatpush3.bf16.msra.mxu1 %v3754_v24 }
 0x268   :  { %2856 = vmatprep.subr.bf16.mxu0 %v3472_v35  ;;  %2885 = vmatprep.subr.bf16.mxu1 %v4303_v0 }
 0x26b   :  { %2858 = vmatpush1.bf16.msra.mxu0 %v3490_v42  ;;  %2887 = vmatpush3.bf16.msra.mxu1 %v3765_v28 }
 0x26c   :  { %2860 = vmatprep.subr.bf16.mxu0 %v3502_v46  ;;  %2888 = vmatprep.subr.bf16.mxu1 %v4303_v0 }
 0x26f   :  { %2862 = vmatpush1.bf16.msra.mxu0 %v3523_v55  ;;  %2890 = vmatpush3.bf16.msra.mxu1 %v3775_v33 }
 0x270   :  { %2864 = vmatprep.subr.bf16.mxu0 %v3532_v58  ;;  %2891 = vmatprep.subr.bf16.mxu1 %v4303_v0 }
 0x273   :  { %2866 = vmatpush1.bf16.msra.mxu0 %v3553_v4  ;;  %2893 = vmatpush3.bf16.msra.mxu1 %v3785_v38 }
 0x274   :  { %2868 = vmatprep.subr.bf16.mxu0 %v3562_v7  ;;  %2894 = vmatprep.subr.bf16.mxu1 %v4303_v0 }
 0x277   :  { %2870 = vmatpush1.bf16.msra.mxu0 %v3583_v17  ;;  %2896 = vmatpush3.bf16.msra.mxu1 %v3797_v43 }
 0x278   :  { %2872 = vmatprep.subr.bf16.mxu0 %v3592_v21  ;;  %2897 = vmatprep.subr.bf16.mxu1 %v4303_v0 }
 0x27b   :  { %2874 = vmatpush1.bf16.msra.mxu0 %v3613_v32  ;;  %2899 = vmatpush3.bf16.msra.mxu1 %v3807_v47 }
 0x27c   :  { %2876 = vmatprep.subr.bf16.mxu0 %v3622_v36  ;;  %2900 = vmatprep.subr.bf16.mxu1 %v4303_v0 }
 0x27f   :  { %2878 = vmatpush1.bf16.msra.mxu0 %v3631_v41  ;;  %2902 = vmatpush3.bf16.msra.mxu1 %v3817_v50 }
 0x280   :  { %2904 = vmatprep.subr.bf16.mxu0 %v3416_v13  ;;  %2935 = vmatprep.subr.bf16.mxu1 %v4303_v0 }
 0x335   :  { %v824_v2 = vpop.f32.mrb[4].mxu0  ;;  %v895_v23 = vpop.f32.mrb[28].mxu1 }
 0x336   :  { %v3173_v6 = vadd.f32 %v3859_v34, %v824_v2  ;;  %v826_v52 = vpop.f32.mrb[5].mxu0  ;;  %v2395_v10 = vpop.f32.mrb[29].mxu1  ;;  %v896_v22 = vadd.f32 %v895_v23, %v3899_v56 }
 0x337   :  { %v3176_v59 = vadd.f32 %v3861_v39, %v826_v52 }
 0x338   :  { %v2010_v54 = vmul.f32 -1.442695, %v3173_v6 }
 0x339   :  { %v2011_v61 = vmul.f32 -1.442695, %v3176_v59 }
 0x33a   :  { %3234 = vpow2.f32 %v2010_v54 }
 0x33b   :  { %3236 = vpow2.f32 %v2011_v61 }
 0x344   :  { %v3235_v16 = vpop.eup %3234 }
 0x345   :  { %v903_v27 = vadd.f32 1.0, %v3235_v16  ;;  %v3237_v31 = vpop.eup %3236 }
 0x346   :  { %v910_v12 = vadd.f32 1.0, %v3237_v31 }
 0x347   :  { %3238 = vrcp.f32 %v903_v27 }
 0x348   :  { %3240 = vrcp.f32 %v910_v12 }
 0x351   :  { %v3239_v44 = vpop.eup %3238 }
 0x352   :  { %v913_v57 = vmul.f32 %v3239_v44, %v896_v22  ;;  %v3241_v25 = vpop.eup %3240 }
 0x353   :  { %v916_v45 = vsub.f32 1.0, %v3241_v25  ;;  %v918_v2 = vmul.f32 %v3241_v25, %v3950_v49 }
 0x354   :  { %v914_v34 = vadd.f32 %v913_v57, %v3888_v14 }
 0x356   :  { %3242 = vtanh.f32 %v914_v34 }
 0x360   :  { %v3243_v39 = vpop.eup %3242 }
 0x361   :  { %v917_v5 = vmul.f32 %v3243_v39, %v916_v45 }
 0x363   :  { %v3998_v6 = vadd.f32 %v918_v2, %v917_v5 }
 0x365   :  { %920 = vst [vmem:[%s4297_s9 + $0x10] sm:$0xff] %v3998_v6  ;;  %989 = vmatmul.mubr.f32.vlgmr.msra.gmra.mrb[6].mxu0 %v3998_v6  ;;  %2429 = vmatmul.mubr.f32.vlgmr.msra.gmra.mrb[30].mxu1 %v3998_v6 }
 0x366   :  { %2906 = vmatpush1.bf16.msra.mxu0 %v3427_v18  ;;  %2937 = vmatpush3.bf16.msra.mxu1 %v3741_v19 }
 0x367   :  { %2908 = vmatprep.subr.bf16.mxu0 %v3449_v26  ;;  %2938 = vmatprep.subr.bf16.mxu1 %v4303_v0 }
 0x368   :  { %1154 = vmatprep.mubr.f32.mxu0 %v4304_v20  ;;  %2463 = vmatprep.mubr.msk.f32.mxu1 %vm3323_vm0, %v4304_v20 }
 0x36a   :  { %2910 = vmatpush1.bf16.msra.mxu0 %v3460_v30  ;;  %2940 = vmatpush3.bf16.msra.mxu1 %v3754_v24 }
 0x36b   :  { %2912 = vmatprep.subr.bf16.mxu0 %v3472_v35  ;;  %2941 = vmatprep.subr.bf16.mxu1 %v4303_v0 }
 0x36e   :  { %2914 = vmatpush1.bf16.msra.mxu0 %v3490_v42  ;;  %2943 = vmatpush3.bf16.msra.mxu1 %v3765_v28 }
 0x36f   :  { %2916 = vmatprep.subr.bf16.mxu0 %v3502_v46  ;;  %2944 = vmatprep.subr.bf16.mxu1 %v4303_v0 }
 0x372   :  { %2918 = vmatpush1.bf16.msra.mxu0 %v3523_v55  ;;  %2946 = vmatpush3.bf16.msra.mxu1 %v3775_v33 }
 0x373   :  { %2920 = vmatprep.subr.bf16.mxu0 %v3532_v58  ;;  %2947 = vmatprep.subr.bf16.mxu1 %v4303_v0 }
 0x376   :  { %2922 = vmatpush1.bf16.msra.mxu0 %v3553_v4  ;;  %2949 = vmatpush3.bf16.msra.mxu1 %v3785_v38 }
 0x377   :  { %2924 = vmatprep.subr.bf16.mxu0 %v3562_v7  ;;  %2950 = vmatprep.subr.bf16.mxu1 %v4303_v0 }
 0x37a   :  { %2926 = vmatpush1.bf16.msra.mxu0 %v3583_v17  ;;  %2952 = vmatpush3.bf16.msra.mxu1 %v3797_v43 }
 0x37b   :  { %2928 = vmatprep.subr.bf16.mxu0 %v3592_v21  ;;  %2953 = vmatprep.subr.bf16.mxu1 %v4303_v0 }
 0x37e   :  { %2930 = vmatpush1.bf16.msra.mxu0 %v3613_v32  ;;  %2955 = vmatpush3.bf16.msra.mxu1 %v3807_v47 }
 0x37f   :  { %2932 = vmatprep.subr.bf16.mxu0 %v3622_v36  ;;  %2956 = vmatprep.subr.bf16.mxu1 %v4303_v0 }
 0x382   :  { %2934 = vmatpush1.bf16.msra.mxu0 %v3631_v41  ;;  %2958 = vmatpush3.bf16.msra.mxu1 %v3817_v50 }
 0x383   :  { %2960 = vmatprep.subr.bf16.mxu0 %v3416_v13  ;;  %2991 = vmatprep.subr.bf16.mxu1 %v4303_v0 }
 0x438   :  { %v990_v14 = vpop.f32.mrb[6].mxu0  ;;  %v1061_v23 = vpop.f32.mrb[30].mxu1 }
 0x439   :  { %v3179_v52 = vadd.f32 %v3863_v48, %v990_v14  ;;  %v992_v10 = vpop.f32.mrb[7].mxu0  ;;  %v2430_v59 = vpop.f32.mrb[31].mxu1  ;;  %v1062_v44 = vadd.f32 %v1061_v23, %v3899_v56 }
 0x43a   :  { %v3182_v54 = vadd.f32 %v3865_v51, %v992_v10 }
 0x43b   :  { %v2012_v61 = vmul.f32 -1.442695, %v3179_v52 }
 0x43c   :  { %v2013_v16 = vmul.f32 -1.442695, %v3182_v54 }
 0x43d   :  { %3244 = vpow2.f32 %v2012_v61 }
 0x43e   :  { %3246 = vpow2.f32 %v2013_v16 }
 0x447   :  { %v3245_v27 = vpop.eup %3244 }
 0x448   :  { %v1069_v31 = vadd.f32 1.0, %v3245_v27  ;;  %v3247_v12 = vpop.eup %3246 }
 0x449   :  { %v1076_v22 = vadd.f32 1.0, %v3247_v12 }
 0x44a   :  { %3248 = vrcp.f32 %v1069_v31 }
 0x44b   :  { %3250 = vrcp.f32 %v1076_v22 }
 0x454   :  { %v3249_v57 = vpop.eup %3248 }
 0x455   :  { %v1079_v34 = vmul.f32 %v3249_v57, %v1062_v44  ;;  %v3251_v25 = vpop.eup %3250 }
 0x456   :  { %v1082_v45 = vsub.f32 1.0, %v3251_v25  ;;  %v1084_v5 = vmul.f32 %v3251_v25, %v3998_v6 }
 0x457   :  { %v1080_v48 = vadd.f32 %v1079_v34, %v3886_v8 }
 0x459   :  { %3252 = vtanh.f32 %v1080_v48 }
 0x463   :  { %v3253_v51 = vpop.eup %3252 }
 0x464   :  { %v1083_v39 = vmul.f32 %v3253_v51, %v1082_v45 }
 0x466   :  { %v4046_v2 = vadd.f32 %v1084_v5, %v1083_v39 }
 0x468   :  { %1086 = vst [vmem:[%s4297_s9 + $0x18] sm:$0xff] %v4046_v2  ;;  %1155 = vmatmul.mubr.f32.vlgmr.msra.gmra.mrb[8].mxu0 %v4046_v2  ;;  %2464 = vmatmul.mubr.f32.vlgmr.msra.gmra.mrb[32].mxu1 %v4046_v2 }
 0x469   :  { %2962 = vmatpush1.bf16.msra.mxu0 %v3427_v18  ;;  %2993 = vmatpush3.bf16.msra.mxu1 %v3741_v19 }
 0x46a   :  { %2964 = vmatprep.subr.bf16.mxu0 %v3449_v26  ;;  %2994 = vmatprep.subr.bf16.mxu1 %v4303_v0 }
 0x46b   :  { %1320 = vmatprep.mubr.f32.mxu0 %v4304_v20  ;;  %2498 = vmatprep.mubr.msk.f32.mxu1 %vm3323_vm0, %v4304_v20 }
 0x46d   :  { %2966 = vmatpush1.bf16.msra.mxu0 %v3460_v30  ;;  %2996 = vmatpush3.bf16.msra.mxu1 %v3754_v24 }
 0x46e   :  { %2968 = vmatprep.subr.bf16.mxu0 %v3472_v35  ;;  %2997 = vmatprep.subr.bf16.mxu1 %v4303_v0 }
 0x471   :  { %2970 = vmatpush1.bf16.msra.mxu0 %v3490_v42  ;;  %2999 = vmatpush3.bf16.msra.mxu1 %v3765_v28 }
 0x472   :  { %2972 = vmatprep.subr.bf16.mxu0 %v3502_v46  ;;  %3000 = vmatprep.subr.bf16.mxu1 %v4303_v0 }
 0x475   :  { %2974 = vmatpush1.bf16.msra.mxu0 %v3523_v55  ;;  %3002 = vmatpush3.bf16.msra.mxu1 %v3775_v33 }
 0x476   :  { %2976 = vmatprep.subr.bf16.mxu0 %v3532_v58  ;;  %3003 = vmatprep.subr.bf16.mxu1 %v4303_v0 }
 0x479   :  { %2978 = vmatpush1.bf16.msra.mxu0 %v3553_v4  ;;  %3005 = vmatpush3.bf16.msra.mxu1 %v3785_v38 }
 0x47a   :  { %2980 = vmatprep.subr.bf16.mxu0 %v3562_v7  ;;  %3006 = vmatprep.subr.bf16.mxu1 %v4303_v0 }
 0x47d   :  { %2982 = vmatpush1.bf16.msra.mxu0 %v3583_v17  ;;  %3008 = vmatpush3.bf16.msra.mxu1 %v3797_v43 }
 0x47e   :  { %2984 = vmatprep.subr.bf16.mxu0 %v3592_v21  ;;  %3009 = vmatprep.subr.bf16.mxu1 %v4303_v0 }
 0x481   :  { %2986 = vmatpush1.bf16.msra.mxu0 %v3613_v32  ;;  %3011 = vmatpush3.bf16.msra.mxu1 %v3807_v47 }
 0x482   :  { %2988 = vmatprep.subr.bf16.mxu0 %v3622_v36  ;;  %3012 = vmatprep.subr.bf16.mxu1 %v4303_v0 }
 0x485   :  { %2990 = vmatpush1.bf16.msra.mxu0 %v3631_v41  ;;  %3014 = vmatpush3.bf16.msra.mxu1 %v3817_v50 }
 0x486   :  { %3016 = vmatprep.subr.bf16.mxu0 %v3416_v13  ;;  %3047 = vmatprep.subr.bf16.mxu1 %v4303_v0 }
 0x53b   :  { %v1156_v8 = vpop.f32.mrb[8].mxu0  ;;  %v1227_v14 = vpop.f32.mrb[32].mxu1 }
 0x53c   :  { %v3185_v23 = vadd.f32 %v3867_v1, %v1156_v8  ;;  %v1158_v52 = vpop.f32.mrb[9].mxu0  ;;  %v2465_v10 = vpop.f32.mrb[33].mxu1  ;;  %v1228_v22 = vadd.f32 %v1227_v14, %v3899_v56 }
 0x53d   :  { %v3188_v59 = vadd.f32 %v3869_v3, %v1158_v52 }
 0x53e   :  { %v2014_v54 = vmul.f32 -1.442695, %v3185_v23 }
 0x53f   :  { %v2015_v61 = vmul.f32 -1.442695, %v3188_v59 }
 0x540   :  { %3254 = vpow2.f32 %v2014_v54 }
 0x541   :  { %3256 = vpow2.f32 %v2015_v61 }
 0x54a   :  { %v3255_v16 = vpop.eup %3254 }
 0x54b   :  { %v1235_v27 = vadd.f32 1.0, %v3255_v16  ;;  %v3257_v31 = vpop.eup %3256 }
 0x54c   :  { %v1242_v12 = vadd.f32 1.0, %v3257_v31 }
 0x54d   :  { %3258 = vrcp.f32 %v1235_v27 }
 0x54e   :  { %3260 = vrcp.f32 %v1242_v12 }
 0x557   :  { %v3259_v44 = vpop.eup %3258 }
 0x558   :  { %v1245_v57 = vmul.f32 %v3259_v44, %v1228_v22  ;;  %v3261_v34 = vpop.eup %3260 }
 0x559   :  { %v1248_v48 = vsub.f32 1.0, %v3261_v34  ;;  %v1250_v45 = vmul.f32 %v3261_v34, %v4046_v2 }
 0x55a   :  { %v1246_v1 = vadd.f32 %v1245_v57, %v3892_v60 }
 0x55c   :  { %3262 = vtanh.f32 %v1246_v1 }
 0x566   :  { %v3263_v3 = vpop.eup %3262 }
 0x567   :  { %v1249_v25 = vmul.f32 %v3263_v3, %v1248_v48  ;;  %v1795_v3 = vld [vmem:[#allocation3 + $0x20] sm:$0xff] }
 0x569   :  { %v4094_v51 = vadd.f32 %v1250_v45, %v1249_v25  ;;  %v1796_v25 = vld [vmem:[#allocation3 + $0x28] sm:$0xff]  ;;  %v1797_v45 = vld [vmem:[#allocation3 + $0x30] sm:$0xff] }
 0x56b   :  { %1252 = vst [vmem:[%s4297_s9 + $0x20] sm:$0xff] %v4094_v51  ;;  %1321 = vmatmul.mubr.f32.vlgmr.msra.gmra.mrb[10].mxu0 %v4094_v51  ;;  %2499 = vmatmul.mubr.f32.vlgmr.msra.gmra.mrb[34].mxu1 %v4094_v51 }
 0x56c   :  { %3018 = vmatpush1.bf16.msra.mxu0 %v3427_v18  ;;  %3049 = vmatpush3.bf16.msra.mxu1 %v3741_v19 }
 0x56d   :  { %3020 = vmatprep.subr.bf16.mxu0 %v3449_v26  ;;  %3050 = vmatprep.subr.bf16.mxu1 %v4303_v0 }
 0x56e   :  { %1486 = vmatprep.mubr.f32.mxu0 %v4304_v20  ;;  %2533 = vmatprep.mubr.msk.f32.mxu1 %vm3323_vm0, %v4304_v20 }
 0x570   :  { %3022 = vmatpush1.bf16.msra.mxu0 %v3460_v30  ;;  %3052 = vmatpush3.bf16.msra.mxu1 %v3754_v24 }
 0x571   :  { %3024 = vmatprep.subr.bf16.mxu0 %v3472_v35  ;;  %3053 = vmatprep.subr.bf16.mxu1 %v4303_v0 }
 0x574   :  { %3026 = vmatpush1.bf16.msra.mxu0 %v3490_v42  ;;  %3055 = vmatpush3.bf16.msra.mxu1 %v3765_v28 }
 0x575   :  { %3028 = vmatprep.subr.bf16.mxu0 %v3502_v46  ;;  %3056 = vmatprep.subr.bf16.mxu1 %v4303_v0 }
 0x578   :  { %3030 = vmatpush1.bf16.msra.mxu0 %v3523_v55  ;;  %3058 = vmatpush3.bf16.msra.mxu1 %v3775_v33 }
 0x579   :  { %3032 = vmatprep.subr.bf16.mxu0 %v3532_v58  ;;  %3059 = vmatprep.subr.bf16.mxu1 %v4303_v0 }
 0x57c   :  { %3034 = vmatpush1.bf16.msra.mxu0 %v3553_v4  ;;  %3061 = vmatpush3.bf16.msra.mxu1 %v3785_v38 }
 0x57d   :  { %3036 = vmatprep.subr.bf16.mxu0 %v3562_v7  ;;  %3062 = vmatprep.subr.bf16.mxu1 %v4303_v0 }
 0x580   :  { %3038 = vmatpush1.bf16.msra.mxu0 %v3583_v17  ;;  %3064 = vmatpush3.bf16.msra.mxu1 %v3797_v43 }
 0x581   :  { %3040 = vmatprep.subr.bf16.mxu0 %v3592_v21  ;;  %3065 = vmatprep.subr.bf16.mxu1 %v4303_v0 }
 0x584   :  { %3042 = vmatpush1.bf16.msra.mxu0 %v3613_v32  ;;  %3067 = vmatpush3.bf16.msra.mxu1 %v3807_v47 }
 0x585   :  { %3044 = vmatprep.subr.bf16.mxu0 %v3622_v36  ;;  %3068 = vmatprep.subr.bf16.mxu1 %v4303_v0 }
 0x588   :  { %3046 = vmatpush1.bf16.msra.mxu0 %v3631_v41  ;;  %3070 = vmatpush3.bf16.msra.mxu1 %v3817_v50 }
 0x589   :  { %3072 = vmatprep.subr.bf16.mxu0 %v3416_v13  ;;  %3103 = vmatprep.subr.bf16.mxu1 %v4303_v0 }
 0x63e   :  { %v1322_v60 = vpop.f32.mrb[10].mxu0  ;;  %v1393_v39 = vpop.f32.mrb[34].mxu1 }
 0x63f   :  { %v3191_v5 = vadd.f32 %v3871_v9, %v1322_v60  ;;  %v1324_v8 = vpop.f32.mrb[11].mxu0  ;;  %v2500_v14 = vpop.f32.mrb[35].mxu1  ;;  %v1394_v13 = vadd.f32 %v1393_v39, %v3899_v56  ;;  %v1798_v60 = vld [vmem:[#allocation3 + $0x38] sm:$0xff] }
 0x640   :  { %v3194_v23 = vadd.f32 %v3873_v11, %v1324_v8  ;;  %v3139_v39 = vpack.c.bf16 %v1798_v60, %v1797_v45  ;;  %v1800_v8 = vld [vmem:[#allocation3 + $0x48] sm:$0xff] }
 0x641   :  { %v2016_v52 = vmul.f32 -1.442695, %v3191_v5  ;;  %v1799_v5 = vld [vmem:[#allocation3 + $0x40] sm:$0xff] }
 0x642   :  { %v2017_v10 = vmul.f32 -1.442695, %v3194_v23  ;;  %v3143_v14 = vpack.c.bf16 %v1800_v8, %v1799_v5  ;;  %v1801_v23 = vld [vmem:[#allocation3 + $0x50] sm:$0xff] }
 0x643   :  { %3264 = vpow2.f32 %v2016_v52  ;;  %v1802_v52 = vld [vmem:[#allocation3 + $0x58] sm:$0xff] }
 0x644   :  { %3266 = vpow2.f32 %v2017_v10  ;;  %v3147_v10 = vpack.c.bf16 %v1802_v52, %v1801_v23 }
 0x64d   :  { %v3265_v59 = vpop.eup %3264 }
 0x64e   :  { %v1401_v54 = vadd.f32 1.0, %v3265_v59  ;;  %v3267_v61 = vpop.eup %3266  ;;  %v1803_v59 = vld [vmem:[#allocation3 + $0x60] sm:$0xff] }
 0x64f   :  { %v1408_v16 = vadd.f32 1.0, %v3267_v61 }
 0x650   :  { %3268 = vrcp.f32 %v1401_v54  ;;  %v1804_v54 = vld [vmem:[#allocation3 + $0x68] sm:$0xff] }
 0x651   :  { %3270 = vrcp.f32 %v1408_v16  ;;  %v3151_v61 = vpack.c.bf16 %v1804_v54, %v1803_v59  ;;  %v1805_v16 = vld [vmem:[#allocation3 + $0x70] sm:$0xff] }
 0x65a   :  { %v3269_v27 = vpop.eup %3268 }
 0x65b   :  { %v1411_v31 = vmul.f32 %v3269_v27, %v1394_v13  ;;  %v3271_v12 = vpop.eup %3270  ;;  %v1806_v13 = vld [vmem:[#allocation3 + $0x78] sm:$0xff] }
 0x65c   :  { %v1414_v22 = vsub.f32 1.0, %v3271_v12  ;;  %v1416_v57 = vmul.f32 %v3271_v12, %v4094_v51  ;;  %v3155_v27 = vpack.c.bf16 %v1806_v13, %v1805_v16  ;;  %v2025_v12 = vadd.f32 -1.0, %v4046_v2 }
 0x65d   :  { %v1412_v9 = vadd.f32 %v1411_v31, %v3890_v15  ;;  %v2023_v31 = vadd.f32 -1.0, %v3950_v49 }
 0x65e   :  { %vm1770_vm4 = vcmp.gt.f32.partialorder %v2025_v12, 0.0 }
 0x65f   :  { %3272 = vtanh.f32 %v1412_v9  ;;  %v2024_v9 = vadd.f32 -1.0, %v3998_v6  ;;  %vm1768_vm2 = vcmp.gt.f32.partialorder %v2023_v31, 0.0 }
 0x661   :  { %vm1769_vm3 = vcmp.gt.f32.partialorder %v2024_v9, 0.0 }
 0x669   :  { %v3273_v11 = vpop.eup %3272 }
 0x66a   :  { %v1415_v44 = vmul.f32 %v3273_v11, %v1414_v22  ;;  %v2026_v22 = vadd.f32 -1.0, %v4094_v51 }
 0x66c   :  { %v4142_v1 = vadd.f32 %v1416_v57, %v1415_v44  ;;  %vm1771_vm5 = vcmp.gt.f32.partialorder %v2026_v22, 0.0 }
 0x66e   :  { %1418 = vst [vmem:[%s4297_s9 + $0x28] sm:$0xff] %v4142_v1  ;;  %1487 = vmatmul.mubr.f32.vlgmr.msra.gmra.mrb[12].mxu0 %v4142_v1  ;;  %2534 = vmatmul.mubr.f32.vlgmr.msra.gmra.mrb[36].mxu1 %v4142_v1  ;;  %v2027_v11 = vadd.f32 -1.0, %v4142_v1 }
 0x66f   :  { %3074 = vmatpush1.bf16.msra.mxu0 %v3427_v18  ;;  %3105 = vmatpush3.bf16.msra.mxu1 %v3741_v19  ;;  %v1791_v18 = vld [vmem:[#allocation3] sm:$0xff] }
 0x670   :  { %3076 = vmatprep.subr.bf16.mxu0 %v3449_v26  ;;  %3106 = vmatprep.subr.bf16.mxu1 %v4303_v0  ;;  %v1792_v26 = vld [vmem:[#allocation3 + $0x8] sm:$0xff]  ;;  %vm1772_vm6 = vcmp.gt.f32.partialorder %v2027_v11, 0.0 }
 0x671   :  { %1652 = vmatprep.mubr.f32.mxu0 %v4304_v20  ;;  %2568 = vmatprep.mubr.msk.f32.mxu1 %vm3323_vm0, %v4304_v20 }
 0x673   :  { %3078 = vmatpush1.bf16.msra.mxu0 %v3460_v30  ;;  %3108 = vmatpush3.bf16.msra.mxu1 %v3754_v24  ;;  %v3127_v30 = vpack.c.bf16 %v1792_v26, %v1791_v18 }
 0x674   :  { %3080 = vmatprep.subr.bf16.mxu0 %v3472_v35  ;;  %3109 = vmatprep.subr.bf16.mxu1 %v4303_v0 }
 0x677   :  { %3082 = vmatpush1.bf16.msra.mxu0 %v3490_v42  ;;  %3111 = vmatpush3.bf16.msra.mxu1 %v3765_v28 }
 0x678   :  { %3084 = vmatprep.subr.bf16.mxu0 %v3502_v46  ;;  %3112 = vmatprep.subr.bf16.mxu1 %v4303_v0 }
 0x67b   :  { %3086 = vmatpush1.bf16.msra.mxu0 %v3523_v55  ;;  %3114 = vmatpush3.bf16.msra.mxu1 %v3775_v33 }
 0x67c   :  { %3088 = vmatprep.subr.bf16.mxu0 %v3532_v58  ;;  %3115 = vmatprep.subr.bf16.mxu1 %v4303_v0 }
 0x67f   :  { %3090 = vmatpush1.bf16.msra.mxu0 %v3553_v4  ;;  %3117 = vmatpush3.bf16.msra.mxu1 %v3785_v38 }
 0x680   :  { %3092 = vmatprep.subr.bf16.mxu0 %v3562_v7  ;;  %3118 = vmatprep.subr.bf16.mxu1 %v4303_v0 }
 0x683   :  { %3094 = vmatpush1.bf16.msra.mxu0 %v3583_v17  ;;  %3120 = vmatpush3.bf16.msra.mxu1 %v3797_v43 }
 0x684   :  { %3096 = vmatprep.subr.bf16.mxu0 %v3592_v21  ;;  %3121 = vmatprep.subr.bf16.mxu1 %v4303_v0 }
 0x687   :  { %3098 = vmatpush1.bf16.msra.mxu0 %v3613_v32  ;;  %3123 = vmatpush3.bf16.msra.mxu1 %v3807_v47 }
 0x688   :  { %3100 = vmatprep.subr.bf16.mxu0 %v3622_v36  ;;  %3124 = vmatprep.subr.bf16.mxu1 %v4303_v0  ;;  %v2022_v0 = vadd.f32 -1.0, %v3902_v63  ;;  %v3135_v63 = vpack.c.bf16 %v1796_v25, %v1795_v3 }
 0x68a   :  { %vm1767_vm1 = vcmp.gt.f32.partialorder %v2022_v0, 0.0 }
 0x68b   :  { %3102 = vmatpush1.bf16.msra.mxu0 %v3631_v41  ;;  %3126 = vmatpush3.bf16.msra.mxu1 %v3817_v50  ;;  %v1793_v50 = vld [vmem:[#allocation3 + $0x10] sm:$0xff] }
 0x68c   :  { %3128 = vmatprep.subr.bf16.mxu0 %v3127_v30 }
 0x741   :  { %v1488_v35 = vpop.f32.mrb[12].mxu0  ;;  %v1559_v42 = vpop.f32.mrb[36].mxu1 }
 0x742   :  { %v3197_v46 = vadd.f32 %v3876_v29, %v1488_v35  ;;  %v1490_v55 = vpop.f32.mrb[13].mxu0  ;;  %v2535_v58 = vpop.f32.mrb[37].mxu1  ;;  %v1560_v19 = vadd.f32 %v1559_v42, %v3899_v56  ;;  %v1794_v29 = vld [vmem:[#allocation3 + $0x18] sm:$0xff] }
 0x743   :  { %v3200_v4 = vadd.f32 %v3878_v37, %v1490_v55  ;;  %v3131_v48 = vpack.c.bf16 %v1794_v29, %v1793_v50 }
 0x744   :  { %v2018_v7 = vmul.f32 -1.442695, %v3197_v46 }
 0x745   :  { %v2019_v17 = vmul.f32 -1.442695, %v3200_v4 }
 0x746   :  { %3274 = vpow2.f32 %v2018_v7  ;;  %v4305_v7 = vld [vmem:[#allocation6_spill] sm:$0xff] }
 0x747   :  { %3276 = vpow2.f32 %v2019_v17 }
 0x750   :  { %v3275_v21 = vpop.eup %3274 }
 0x751   :  { %v1567_v32 = vadd.f32 1.0, %v3275_v21  ;;  %v3277_v36 = vpop.eup %3276 }
 0x752   :  { %v1574_v41 = vadd.f32 1.0, %v3277_v36 }
 0x753   :  { %3278 = vrcp.f32 %v1567_v32 }
 0x754   :  { %3280 = vrcp.f32 %v1574_v41 }
 0x75d   :  { %v3279_v24 = vpop.eup %3278 }
 0x75e   :  { %v1577_v28 = vmul.f32 %v3279_v24, %v1560_v19  ;;  %v3281_v38 = vpop.eup %3280 }
 0x75f   :  { %v1580_v43 = vsub.f32 1.0, %v3281_v38  ;;  %v1582_v15 = vmul.f32 %v3281_v38, %v4142_v1 }
 0x760   :  { %v1578_v33 = vadd.f32 %v1577_v28, %v3896_v40  ;;  %v3324_v40 = vmov 1.0  }
 0x762   :  { %3282 = vtanh.f32 %v1578_v33 }
 0x76c   :  { %v3283_v47 = vpop.eup %3282 }
 0x76d   :  { %v1581_v37 = vmul.f32 %v3283_v47, %v1580_v43 }
 0x76f   :  { %v4189_v34 = vadd.f32 %v1582_v15, %v1581_v37 }
 0x771   :  { %1584 = vst [vmem:[%s4297_s9 + $0x30] sm:$0xff] %v4189_v34  ;;  %1653 = vmatmul.mubr.f32.vlgmr.msra.gmra.mrb[14].mxu0 %v4189_v34  ;;  %2569 = vmatmul.mubr.f32.vlgmr.msra.gmra.mrb[38].mxu1 %v4189_v34  ;;  %v2028_v49 = vadd.f32 -1.0, %v4189_v34 }
 0x772   :  { %3130 = vmatpush3.bf16.msra.mxu0 %v3127_v30  ;;  %2603 = vmatprep.mubr.msk.f32.mxu0 %vm1767_vm1, %v3324_v40 }
 0x773   :  { %3132 = vmatprep.subr.bf16.mxu0 %v3131_v48  ;;  %vm1773_vm7 = vcmp.gt.f32.partialorder %v2028_v49, 0.0 }
 0x776   :  { %3134 = vmatpush3.bf16.msra.mxu0 %v3131_v48 }
 0x777   :  { %3136 = vmatprep.subr.bf16.mxu0 %v3135_v63 }
 0x77a   :  { %3138 = vmatpush3.bf16.msra.mxu0 %v3135_v63 }
 0x77b   :  { %3140 = vmatprep.subr.bf16.mxu0 %v3139_v39 }
 0x77e   :  { %3142 = vmatpush3.bf16.msra.mxu0 %v3139_v39 }
 0x77f   :  { %3144 = vmatprep.subr.bf16.mxu0 %v3143_v14 }
 0x782   :  { %3146 = vmatpush3.bf16.msra.mxu0 %v3143_v14 }
 0x783   :  { %3148 = vmatprep.subr.bf16.mxu0 %v3147_v10 }
 0x786   :  { %3150 = vmatpush3.bf16.msra.mxu0 %v3147_v10 }
 0x787   :  { %3152 = vmatprep.subr.bf16.mxu0 %v3151_v61 }
 0x78a   :  { %3154 = vmatpush3.bf16.msra.mxu0 %v3151_v61 }
 0x78b   :  { %3156 = vmatprep.subr.bf16.mxu0 %v3155_v27 }
 0x78e   :  { %3158 = vmatpush3.bf16.msra.mxu0 %v3155_v27 }
 0x791   :  { %2604 = vmatmul.mubr.msk.f32.vlgmr.msra.gmra.mrb[16].mxu0 %vm1768_vm2, %v3324_v40 }
 0x792   :  { %2606 = vmatprep.mubr.msk.f32.mxu0 %vm1769_vm3, %v3324_v40 }
 0x795   :  { %2607 = vmatmul.mubr.msk.f32.gmra.mrb[18].mxu0 %vm1770_vm4, %v3324_v40 }
 0x796   :  { %2609 = vmatprep.mubr.msk.f32.mxu0 %vm1771_vm5, %v3324_v40 }
 0x799   :  { %2610 = vmatmul.mubr.msk.f32.gmra.mrb[20].mxu0 %vm1772_vm6, %v3324_v40 }
 0x79a   :  { %2612 = vmatprep.mubr.msk.f32.mxu0 %vm1773_vm7, %v3324_v40 }
 0x844   :  { %v1654_v6 = vpop.f32.mrb[14].mxu0  ;;  %v1725_v2 = vpop.f32.mrb[38].mxu1 }
 0x845   :  { %v3203_v51 = vadd.f32 %v3880_v53, %v1654_v6  ;;  %v1656_v44 = vpop.f32.mrb[15].mxu0  ;;  %v2570_v57 = vpop.f32.mrb[39].mxu1  ;;  %v1726_v55 = vadd.f32 %v1725_v2, %v3899_v56 }
 0x846   :  { %v3206_v1 = vadd.f32 %v3882_v62, %v1656_v44  ;;  %v4217_v62 = vld [vmem:[%s4294_s6] ss:$0 sm:$0xff] }
 0x847   :  { %v2020_v18 = vmul.f32 -1.442695, %v3203_v51 }
 0x848   :  { %v2021_v26 = vmul.f32 -1.442695, %v3206_v1 }
 0x849   :  { %3284 = vpow2.f32 %v2020_v18 }
 0x84a   :  { %3286 = vpow2.f32 %v2021_v26 }
 0x853   :  { %v3285_v30 = vpop.eup %3284 }
 0x854   :  { %v1733_v35 = vadd.f32 1.0, %v3285_v30  ;;  %v3287_v42 = vpop.eup %3286 }
 0x855   :  { %v1740_v46 = vadd.f32 1.0, %v3287_v42 }
 0x856   :  { %3288 = vrcp.f32 %v1733_v35 }
 0x857   :  { %3290 = vrcp.f32 %v1740_v46 }
 0x860   :  { %v3289_v58 = vpop.eup %3288 }
 0x861   :  { %v1743_v4 = vmul.f32 %v3289_v58, %v1726_v55  ;;  %v3291_v33 = vpop.eup %3290 }
 0x862   :  { %v1746_v29 = vsub.f32 1.0, %v3291_v33  ;;  %v1748_v25 = vmul.f32 %v3291_v33, %v4189_v34 }
 0x863   :  { %v1744_v53 = vadd.f32 %v1743_v4, %v4305_v7 }
 0x864   :  { %v2605_v17 = vpop.f32.mrb[16].mxu0 }
 0x865   :  { %3292 = vtanh.f32 %v1744_v53  ;;  %v1880_v21 = vpop.f32.mrb[17].mxu0  ;;  %v1886_v36 = vadd.f32 %v2605_v17, %v4217_v62 }
 0x866   :  { %v1881_v32 = vadd.f32 %v4217_v62, %v1880_v21 }
 0x868   :  { %v2047_v41 = vadd.f32 -1.0, %v1881_v32  ;;  %1929 = vst [vmem:[%s4296_s8] sm:$0xff] %v1881_v32  ;;  %v1930_v56 = vmul.f32 0.95, %v1881_v32  ;;  %v2608_v19 = vpop.f32.mrb[18].mxu0 }
 0x869   :  { %v1890_v24 = vpop.f32.mrb[19].mxu0  ;;  %v1896_v5 = vadd.f32 %v2608_v19, %v4217_v62 }
 0x86a   :  { %vm1925_vm8 = vcmp.gt.f32.partialorder %v2047_v41, 0.0  ;;  %v1931_v28 = vadd.f32 %v1930_v56, %v1886_v36  ;;  %v1891_v37 = vadd.f32 %v4217_v62, %v1890_v24 }
 0x86b   :  { %v2048_v38 = vsel %vm1925_vm8, 1.0, %v4304_v20 }
 0x86c   :  { %1928 = vst [vmem:[%s4295_s7] sm:$0xff] %v2048_v38  ;;  %v1932_v43 = vsub.f32 %v1931_v28, %v2048_v38  ;;  %v2611_v47 = vpop.f32.mrb[20].mxu0 }
 0x86d   :  { %v1900_v50 = vpop.f32.mrb[21].mxu0  ;;  %v1906_v27 = vadd.f32 %v2611_v47, %v4217_v62 }
 0x86e   :  { %1938 = vst [vmem:[%s4296_s8 + $0x8] sm:$0xff] %v1932_v43  ;;  %v2049_v15 = vadd.f32 -1.0, %v1932_v43  ;;  %v1939_v0 = vmul.f32 0.95, %v1932_v43  ;;  %v1901_v59 = vadd.f32 %v4217_v62, %v1900_v50 }
 0x86f   :  { %v3293_v48 = vpop.eup %3292 }
 0x870   :  { %v1747_v3 = vmul.f32 %v3293_v48, %v1746_v29  ;;  %vm1934_vm9 = vcmp.gt.f32.partialorder %v2049_v15, 0.0  ;;  %v1940_v63 = vadd.f32 %v1939_v0, %v1891_v37 }
 0x871   :  { %v2050_v45 = vsel %vm1934_vm9, 1.0, %v4304_v20 }
 0x872   :  { %v1749_v60 = vadd.f32 %v1748_v25, %v1747_v3  ;;  %1937 = vst [vmem:[%s4295_s7 + $0x8] sm:$0xff] %v2050_v45  ;;  %v1941_v39 = vsub.f32 %v1940_v63, %v2050_v45 }
 0x874   :  { %1750 = vst [vmem:[%s4297_s9 + $0x38] sm:$0xff] %v1749_v60  ;;  %v2051_v8 = vadd.f32 -1.0, %v1941_v39  ;;  %1947 = vst [vmem:[%s4296_s8 + $0x10] sm:$0xff] %v1941_v39  ;;  %v1948_v34 = vmul.f32 0.95, %v1941_v39  ;;  %v2029_v14 = vadd.f32 -1.0, %v1749_v60 }
 0x876   :  { %vm1943_vm10 = vcmp.gt.f32.partialorder %v2051_v8, 0.0  ;;  %v1949_v23 = vadd.f32 %v1948_v34, %v1896_v5  ;;  %vm1774_vm11 = vcmp.gt.f32.partialorder %v2029_v14, 0.0 }
 0x877   :  { %v2052_v52 = vsel %vm1943_vm10, 1.0, %v4304_v20  ;;  %2613 = vmatmul.mubr.msk.f32.gmra.mrb[22].mxu0 %vm1774_vm11, %v3324_v40 }
 0x878   :  { %1946 = vst [vmem:[%s4295_s7 + $0x10] sm:$0xff] %v2052_v52  ;;  %v1950_v10 = vsub.f32 %v1949_v23, %v2052_v52 }
 0x87a   :  { %v2053_v54 = vadd.f32 -1.0, %v1950_v10  ;;  %1956 = vst [vmem:[%s4296_s8 + $0x18] sm:$0xff] %v1950_v10  ;;  %v1957_v61 = vmul.f32 0.95, %v1950_v10 }
 0x87c   :  { %vm1952_vm12 = vcmp.gt.f32.partialorder %v2053_v54, 0.0  ;;  %v1958_v16 = vadd.f32 %v1957_v61, %v1901_v59 }
 0x87d   :  { %v2054_v13 = vsel %vm1952_vm12, 1.0, %v4304_v20 }
 0x87e   :  { %1955 = vst [vmem:[%s4295_s7 + $0x18] sm:$0xff] %v2054_v13  ;;  %v1959_v40 = vsub.f32 %v1958_v16, %v2054_v13 }
 0x880   :  { %v2055_v31 = vadd.f32 -1.0, %v1959_v40  ;;  %1965 = vst [vmem:[%s4296_s8 + $0x20] sm:$0xff] %v1959_v40  ;;  %v1966_v9 = vmul.f32 0.95, %v1959_v40 }
 0x882   :  { %vm1961_vm13 = vcmp.gt.f32.partialorder %v2055_v31, 0.0  ;;  %v1967_v12 = vadd.f32 %v1966_v9, %v1906_v27 }
 0x883   :  { %v2056_v22 = vsel %vm1961_vm13, 1.0, %v4304_v20 }
 0x884   :  { %1964 = vst [vmem:[%s4295_s7 + $0x20] sm:$0xff] %v2056_v22  ;;  %v1968_v11 = vsub.f32 %v1967_v12, %v2056_v22 }
 0x886   :  { %v2057_v49 = vadd.f32 -1.0, %v1968_v11  ;;  %1974 = vst [vmem:[%s4296_s8 + $0x28] sm:$0xff] %v1968_v11  ;;  %v1975_v57 = vmul.f32 0.95, %v1968_v11 }
 0x888   :  { %vm1970_vm14 = vcmp.gt.f32.partialorder %v2057_v49, 0.0 }
 0x889   :  { %v2058_v6 = vsel %vm1970_vm14, 1.0, %v4304_v20 }
 0x88a   :  { %1973 = vst [vmem:[%s4295_s7 + $0x28] sm:$0xff] %v2058_v6 }
 0x94a   :  { %v2614_v2 = vpop.f32.mrb[22].mxu0 }
 0x94b   :  { %v1910_v51 = vpop.f32.mrb[23].mxu0  ;;  %v1916_v26 = vadd.f32 %v2614_v2, %v4217_v62 }
 0x94c   :  { %v1911_v44 = vadd.f32 %v4217_v62, %v1910_v51 }
 0x94e   :  { %v1976_v1 = vadd.f32 %v1975_v57, %v1911_v44 }
 0x950   :  { %v1977_v18 = vsub.f32 %v1976_v1, %v2058_v6 }
 0x952   :  { %v2059_v30 = vadd.f32 -1.0, %v1977_v18  ;;  %1983 = vst [vmem:[%s4296_s8 + $0x30] sm:$0xff] %v1977_v18  ;;  %v1984_v35 = vmul.f32 0.95, %v1977_v18 }
 0x954   :  { %vm1979_vm15 = vcmp.gt.f32.partialorder %v2059_v30, 0.0  ;;  %v1985_v42 = vadd.f32 %v1984_v35, %v1916_v26 }
 0x955   :  { %v2060_v46 = vsel %vm1979_vm15, 1.0, %v4304_v20 }
 0x956   :  { %1982 = vst [vmem:[%s4295_s7 + $0x30] sm:$0xff] %v2060_v46  ;;  %v1986_v55 = vsub.f32 %v1985_v42, %v2060_v46 }
 0x958   :  { %v2061_v58 = vadd.f32 -1.0, %v1986_v55  ;;  %1992 = vst [vmem:[%s4296_s8 + $0x38] sm:$0xff] %v1986_v55 }
 0x95a   :  { %vm1988_vm0 = vcmp.gt.f32.partialorder %v2061_v58, 0.0 }
 0x95b   :  { %v2062_v4 = vsel %vm1988_vm0, 1.0, %v4304_v20 }
 0x95c   :  { %1991 = vst [vmem:[%s4295_s7 + $0x38] sm:$0xff] %v2062_v4 }
 0x95d   :  { %2005 = vsyncpa [#allocation4], 1 }

</bundles_post_ra>
